<compile_context>
chip_gen: v7x
topology: tpu7x:2x2x1
jax: 0.10.0
libtpu: 0.0.40
codegen_flags: <defaults>
</compile_context>

<pallas_src>
import math
from dataclasses import dataclass
from functools import partial

import jax
import jax.numpy as jnp
from jax import lax
from jax.experimental import pallas as pl
from jax.experimental.pallas import tpu as pltpu


# ----------------------------- config -------------------------------------

@dataclass
class MambaConfig:
    d_model: int = 32
    n_layer: int = 2
    vocab_size: int = 33
    d_state: int = 16
    d_conv: int = 4
    expand: int = 2
    rms_norm: bool = True
    residual_in_fp32: bool = True
    fused_add_norm: bool = True
    dropout: float = 0.2


def _silu(x):
    return x * (1.0 / (1.0 + jnp.exp(-x)))


def _softplus(x):
    # numerically-stable softplus from basic ops (safe inside Mosaic)
    return jnp.maximum(x, 0.0) + jnp.log(1.0 + jnp.exp(-jnp.abs(x)))


# ----------------------------- Pallas kernels ------------------------------

def _layernorm_kernel(x_ref, w_ref, b_ref, o_ref, *, eps):
    x = x_ref[...]
    mu = jnp.mean(x, axis=-1, keepdims=True)
    xc = x - mu
    var = jnp.mean(xc * xc, axis=-1, keepdims=True)
    o_ref[...] = xc * lax.rsqrt(var + eps) * w_ref[...] + b_ref[...]


def layernorm_pallas(x, w, b, eps=1e-5):
    M, D = x.shape
    return pl.pallas_call(
        partial(_layernorm_kernel, eps=eps),
        out_shape=jax.ShapeDtypeStruct((M, D), jnp.float32),
    )(x, w, b)


def _mamba_block_kernel(hidden_ref, resid_ref, norm_w_ref,
                        w_in_x_ref, w_in_z_ref, conv_w_ref, conv_b_ref,
                        w_dt_ref, dt_bias_ref, w_b_ref, w_c_ref,
                        a_ref, d_skip_ref, w_out_ref, fc_b_ref,
                        out_ref, resid_out_ref, y_scr, *, eps):
    """One full Mamba block (fused_add_norm, prenorm) for one (direction, batch)
    grid point.  out_proj is pre-folded with the matching hidden_fc half, so
    out_ref already holds this direction's contribution to the layer output."""
    L, D = hidden_ref.shape
    K, Din = conv_w_ref.shape
    N = a_ref.shape[0]
    f32 = jnp.float32

    # --- fused residual add + RMSNorm ---
    resid = hidden_ref[...] + resid_ref[...]                       # (L, D)
    resid_out_ref[...] = resid
    ms = jnp.mean(resid * resid, axis=-1, keepdims=True)
    normed = resid * lax.rsqrt(ms + eps) * norm_w_ref[...]         # (L, D)

    # --- in_proj (x / z halves split at prep time -> two matmuls, no lane slicing) ---
    x_lin = jnp.dot(normed, w_in_x_ref[...], preferred_element_type=f32)   # (L, Din)
    z = jnp.dot(normed, w_in_z_ref[...], preferred_element_type=f32)       # (L, Din)

    # --- depthwise causal conv1d + SiLU (time on sublanes, vectorized over L) ---
    conv_w = conv_w_ref[...]                                       # (K, Din)
    ti = lax.broadcasted_iota(jnp.int32, (L, L), 0)                # output time
    si = lax.broadcasted_iota(jnp.int32, (L, L), 1)                # source time
    acc = jnp.zeros((L, Din), f32) + conv_b_ref[...]
    for k in range(K):                                             # K = 4, static
        s = K - 1 - k
        if s == 0:
            acc = acc + conv_w[k:k + 1, :] * x_lin
        else:
            shift = (si == (ti - s)).astype(f32)                   # causal shift-by-s
            acc = acc + conv_w[k:k + 1, :] * jnp.dot(
                shift, x_lin, preferred_element_type=f32)
    xc = _silu(acc)                                                # (L, Din)

    # --- projections (dt_proj folded into x_proj at prep; bias applied before softplus) ---
    dt = _softplus(jnp.dot(xc, w_dt_ref[...], preferred_element_type=f32)
                   + dt_bias_ref[...])                             # (L, Din)
    cm = lax.dot_general(xc, w_c_ref[...], (((1,), (1,)), ((), ())),
                         preferred_element_type=f32)               # (L, N)

    # --- selective scan: state h is (N, Din), lane-dense in Din; unrolled over L ---
    a_t = a_ref[...]                                               # (N, Din) = -exp(A_log)^T
    w_b = w_b_ref[...]                                             # (N, Din)
    du = dt * xc                                                   # (L, Din)
    h = jnp.zeros((N, Din), f32)
    for t in range(L):                                             # L = 8, unrolled
        dt_row = dt[t:t + 1, :]                                    # (1, Din)
        u_row = xc[t:t + 1, :]                                     # (1, Din)
        # B_t as a column via a tiny matvec (same math as x_proj B rows)
        b_col = lax.dot_general(w_b, u_row, (((1,), (1,)), ((), ())),
                                preferred_element_type=f32)        # (N, 1)
        h = jnp.exp(dt_row * a_t) * h + b_col * du[t:t + 1, :]     # (N, Din)
        y_scr[t:t + 1, :] = jnp.dot(cm[t:t + 1, :], h,
                                    preferred_element_type=f32)    # (1, Din)

    y = y_scr[...] + d_skip_ref[...] * xc                          # + D * u skip
    y = y * _silu(z)                                               # gate with SiLU(z)
    # fused out_proj @ hidden_fc-half (+ hidden_fc bias on forward dir only)
    out_ref[...] = (jnp.dot(y, w_out_ref[...], preferred_element_type=f32)
                    + fc_b_ref[...])                               # (L, D)


def mamba_dual_block_pallas(p, hidden_stack, resid_stack, cfg: MambaConfig):
    """hidden_stack/resid_stack: (2, B, L, D) stacked [forward, backward] inputs.
    Returns (out, resid_out), both (2, B, L, D)."""
    _, B, L, D = hidden_stack.shape
    Din = cfg.expand * D
    N = cfg.d_state
    K = cfg.d_conv

    def act_spec():
        return pl.BlockSpec((None, None, L, D), lambda d, b: (d, b, 0, 0))

    def w_spec(*shape):
        n = len(shape)
        return pl.BlockSpec((None,) + shape, lambda d, b: (d,) + (0,) * n)

    out, resid_out = pl.pallas_call(
        partial(_mamba_block_kernel, eps=1e-5),
        grid=(2, B),                         # direction outer -> weights stay resident
        in_specs=[
            act_spec(),           # hidden
            act_spec(),           # residual
            w_spec(1, D),         # norm_w
            w_spec(D, Din),       # w_in_x
            w_spec(D, Din),       # w_in_z
            w_spec(K, Din),       # conv_w
            w_spec(1, Din),       # conv_b
            w_spec(Din, Din),     # w_dt (x_proj dt-rows composed with dt_proj)
            w_spec(1, Din),       # dt_bias
            w_spec(N, Din),       # w_b
            w_spec(N, Din),       # w_c
            w_spec(N, Din),       # a_t
            w_spec(1, Din),       # d_skip
            w_spec(Din, D),       # w_out (out_proj folded with hidden_fc half)
            w_spec(1, D),         # fc bias (forward dir only; zeros for backward)
        ],
        out_specs=[act_spec(), act_spec()],
        out_shape=(jax.ShapeDtypeStruct((2, B, L, D), jnp.float32),
                   jax.ShapeDtypeStruct((2, B, L, D), jnp.float32)),
        scratch_shapes=[pltpu.VMEM((L, Din), jnp.float32)],
        compiler_params=pltpu.CompilerParams(
            dimension_semantics=("parallel", "parallel")),
    )(hidden_stack, resid_stack, p['norm_w'], p['w_in_x'], p['w_in_z'],
      p['conv_w'], p['conv_b'], p['w_dt'], p['dt_bias'], p['w_b'], p['w_c'],
      p['a_t'], p['d_skip'], p['w_out'], p['fc_b'])
    return out, resid_out


def _final_head_kernel(h_ref, r_ref, w_ref, lm_w_ref, hid_ref, logit_ref, *, eps):
    # fused: final residual add + RMSNorm + lm_head (padded, lane-dense output)
    x = h_ref[...] + r_ref[...]
    ms = jnp.mean(x * x, axis=-1, keepdims=True)
    normed = x * lax.rsqrt(ms + eps) * w_ref[...]
    hid_ref[...] = normed
    logit_ref[...] = jnp.dot(normed, lm_w_ref[...], preferred_element_type=jnp.float32)


def final_head_pallas(hidden, residual, norm_w, lm_w):
    B, L, D = hidden.shape
    Vp = lm_w.shape[1]
    hid, logits = pl.pallas_call(
        partial(_final_head_kernel, eps=1e-5),
        out_shape=(jax.ShapeDtypeStruct((B * L, D), jnp.float32),
                   jax.ShapeDtypeStruct((B * L, Vp), jnp.float32)),
    )(hidden.reshape(B * L, D), residual.reshape(B * L, D), norm_w, lm_w)
    return hid.reshape(B, L, D), logits.reshape(B, L, Vp)


_SELU_ALPHA = 1.6732632423543772
_SELU_SCALE = 1.0507009873554805


def _classifier_kernel(x_ref, scale_ref, shift_ref, w1_ref, b1_ref, w2_ref, b2_ref, o_ref):
    # BatchNorm (inference affine, pre-folded) -> Linear(512) -> SELU -> Linear(1)
    x = x_ref[...] * scale_ref[...] + shift_ref[...]
    h = jnp.dot(x, w1_ref[...], preferred_element_type=jnp.float32) + b1_ref[...]
    h = _SELU_SCALE * jnp.where(h > 0.0, h,
                                _SELU_ALPHA * (jnp.exp(jnp.minimum(h, 0.0)) - 1.0))
    o_ref[...] = jnp.dot(h, w2_ref[...], preferred_element_type=jnp.float32) + b2_ref[...]


def classifier_pallas(x, p):
    B, D = x.shape
    return pl.pallas_call(
        _classifier_kernel,
        out_shape=jax.ShapeDtypeStruct((B, 1), jnp.float32),
    )(x, p['bn_scale'], p['bn_shift'], p['w1'], p['b1'], p['w2'], p['b2'])


# ----------------------------- parameters ----------------------------------

def init_raw_params(key, cfg: MambaConfig):
    """Torch-layout parameters (deterministic stand-in for the PyTorch init)."""
    D = cfg.d_model
    Din = cfg.expand * D
    N = cfg.d_state
    K = cfg.d_conv
    R = math.ceil(D / 16)                  # dt_rank
    keys = iter(jax.random.split(key, 512))

    def nrm(shape, std=0.02):
        return std * jax.random.normal(next(keys), shape, jnp.float32)

    tok = nrm((cfg.vocab_size, D)).at[1].set(0.0)   # padding_idx=1
    seg = nrm((3, D)).at[2].set(0.0)                # padding_idx=2

    def mamba_params():
        dt = jnp.geomspace(1e-3, 1e-1, Din).astype(jnp.float32)
        dt_bias = dt + jnp.log(-jnp.expm1(-dt))     # softplus^{-1}(dt)
        return dict(
            norm_w=jnp.ones((D,), jnp.float32),
            in_proj_w=nrm((2 * Din, D)),
            conv_w=nrm((Din, K), std=0.2),
            conv_b=jnp.zeros((Din,), jnp.float32),
            x_proj_w=nrm((R + 2 * N, Din)),
            dt_proj_w=nrm((Din, R), std=R ** -0.5),
            dt_proj_b=dt_bias,
            A_log=jnp.log(jnp.tile(jnp.arange(1, N + 1, dtype=jnp.float32), (Din, 1))),
            D=jnp.ones((Din,), jnp.float32),
            out_proj_w=nrm((D, Din)) / math.sqrt(cfg.n_layer),
        )

    return dict(
        tok_embed=tok, seg_embed=seg,
        emb_ln_w=jnp.ones((D,), jnp.float32), emb_ln_b=jnp.zeros((D,), jnp.float32),
        layers_f=[mamba_params() for _ in range(cfg.n_layer)],
        layers_b=[mamba_params() for _ in range(cfg.n_layer)],
        hidden_fc=[dict(w=nrm((D, 2 * D)), b=jnp.zeros((D,), jnp.float32))
                   for _ in range(cfg.n_layer)],
        norm_f_w=jnp.ones((D,), jnp.float32),
        lm_head_w=nrm((cfg.vocab_size, D)),
        bn_gamma=jnp.ones((D,), jnp.float32), bn_beta=jnp.zeros((D,), jnp.float32),
        bn_mean=jnp.zeros((D,), jnp.float32), bn_var=jnp.ones((D,), jnp.float32),
        cls1_w=nrm((512, D)), cls1_b=jnp.zeros((512,), jnp.float32),
        cls2_w=nrm((1, 512)), cls2_b=jnp.zeros((1,), jnp.float32),
    )


def prepare_params(raw, cfg: MambaConfig):
    """One-time re-layout: pre-transpose weights, fold dt_proj into x_proj,
    fold hidden_fc halves into out_proj, stack forward/backward weights along a
    leading direction axis, fold BatchNorm affine, pad lm_head to 128 lanes."""
    D = cfg.d_model
    Din = cfg.expand * D
    N = cfg.d_state
    R = math.ceil(D / 16)
    Vp = ((cfg.vocab_size + 127) // 128) * 128

    def prep_mamba(m, w_fc_half):
        w_xp = m['x_proj_w']                                   # (R + 2N, Din)
        return dict(
            norm_w=m['norm_w'].reshape(1, D),
            w_in_x=m['in_proj_w'][:Din, :].T,                  # (D, Din)
            w_in_z=m['in_proj_w'][Din:, :].T,                  # (D, Din)
            conv_w=m['conv_w'].T,                              # (K, Din)
            conv_b=m['conv_b'].reshape(1, Din),
            w_dt=w_xp[:R, :].T @ m['dt_proj_w'].T,             # (Din, Din), bias separate
            dt_bias=m['dt_proj_b'].reshape(1, Din),
            w_b=w_xp[R:R + N, :],                              # (N, Din)
            w_c=w_xp[R + N:, :],                               # (N, Din)
            a_t=(-jnp.exp(m['A_log'])).T,                      # (N, Din)
            d_skip=m['D'].reshape(1, Din),
            w_out=m['out_proj_w'].T @ w_fc_half,               # (Din, D) out_proj ∘ hidden_fc
        )

    def prep_layer(mf, mb, hfc):
        w = hfc['w']                                           # (D, 2D)
        pf = prep_mamba(mf, w[:, :D].T)
        pb = prep_mamba(mb, w[:, D:].T)
        stacked = {k: jnp.stack([pf[k], pb[k]]) for k in pf}   # leading dir axis
        stacked['fc_b'] = jnp.stack([hfc['b'].reshape(1, D),
                                     jnp.zeros((1, D), jnp.float32)])
        return stacked

    bn_scale = raw['bn_gamma'] / jnp.sqrt(raw['bn_var'] + 1e-5)
    bn_shift = raw['bn_beta'] - raw['bn_mean'] * bn_scale
    lm_w = jnp.zeros((D, Vp), jnp.float32).at[:, :cfg.vocab_size].set(raw['lm_head_w'].T)

    return dict(
        tok_embed=raw['tok_embed'], seg_embed=raw['seg_embed'],
        emb_ln_w=raw['emb_ln_w'].reshape(1, D), emb_ln_b=raw['emb_ln_b'].reshape(1, D),
        layers=[prep_layer(raw['layers_f'][i], raw['layers_b'][i], raw['hidden_fc'][i])
                for i in range(cfg.n_layer)],
        norm_f_w=raw['norm_f_w'].reshape(1, D),
        lm_head_w=lm_w,
        classifier=dict(bn_scale=bn_scale.reshape(1, D), bn_shift=bn_shift.reshape(1, D),
                        w1=raw['cls1_w'].T, b1=raw['cls1_b'].reshape(1, 512),
                        w2=raw['cls2_w'].T, b2=raw['cls2_b'].reshape(1, 1)),
    )


# ----------------------------- model forward -------------------------------

def shift_pad(x, pos):
    """Batched (jit-friendly) equivalent of the torch per-example shift_pad."""
    B, L, D = x.shape
    j = jnp.arange(L)[None, :]                       # (1, L)
    src = j + (L - pos[:, None])                     # (B, L)
    mask = j < pos[:, None]                          # (B, L)
    src = jnp.where(mask, src, 0)
    idx = jnp.broadcast_to(src[:, :, None], x.shape)
    gathered = jnp.take_along_axis(x, idx, axis=1)
    return jnp.where(mask[:, :, None], gathered, 0.0)


def backbone_forward(params, input_ids, seg, pos, cfg: MambaConfig):
    B, L = input_ids.shape
    D = cfg.d_model
    emb = params['tok_embed'][input_ids] + params['seg_embed'][seg]        # (B, L, D)
    hidden = layernorm_pallas(emb.reshape(B * L, D), params['emb_ln_w'],
                              params['emb_ln_b']).reshape(B, L, D)
    zeros = jnp.zeros_like(hidden)
    residual = zeros                                                        # layer 0: residual=None
    for li in range(cfg.n_layer):
        lp = params['layers'][li]
        hid_rev = shift_pad(jnp.flip(hidden, axis=1), pos)
        res_rev = zeros if li == 0 else shift_pad(jnp.flip(residual, axis=1), pos)

        out, resid_out = mamba_dual_block_pallas(
            lp, jnp.stack([hidden, hid_rev]), jnp.stack([residual, res_rev]), cfg)

        out_b = shift_pad(jnp.flip(out[1], axis=1), pos)        # map backward dir back
        r_b = shift_pad(jnp.flip(resid_out[1], axis=1), pos)
        hidden = out[0] + out_b                                  # hidden_fc folded in-kernel
        residual = 0.5 * (resid_out[0] + r_b)
    return hidden, residual


def mamba_lm_head_forward(params, input_ids, seg, pos, cfg: MambaConfig, num_last_tokens=0):
    hidden, residual = backbone_forward(params, input_ids, seg, pos, cfg)
    # fused final add + RMSNorm + lm_head (vocab padded to 128, sliced below)
    hidden_states, lm_logits = final_head_pallas(hidden, residual,
                                                 params['norm_f_w'], params['lm_head_w'])
    if num_last_tokens > 0:
        hidden_states = hidden_states[:, -num_last_tokens:]
        lm_logits = lm_logits[:, -num_last_tokens:]
    lm_logits = lm_logits[..., :cfg.vocab_size]
    cls_hidden = hidden_states[:, 0, :]
    # TODO(synk): PyTorch default module mode is training (batch-stat BatchNorm, stochastic
    # Dropout); we implement deterministic inference semantics (running stats, no dropout).
    cls_logits = classifier_pallas(cls_hidden, params['classifier'])
    return lm_logits, cls_logits, hidden_states


# ----------------------------- main ----------------------------------------

if __name__ == "__main__":
    cfg = MambaConfig(d_model=32, n_layer=2, vocab_size=33)
    key = jax.random.PRNGKey(0)
    pkey, ikey, skey = jax.random.split(key, 3)
    params = prepare_params(init_raw_params(pkey, cfg), cfg)

    Bsz, L = 2, 8
    input_ids = jax.random.randint(ikey, (Bsz, L), 0, cfg.vocab_size)
    seg = jax.random.randint(skey, (Bsz, L), 0, 3)
    pos = jnp.array([8, 6], dtype=jnp.int32)        # per-example valid lengths

    forward = jax.jit(partial(mamba_lm_head_forward, cfg=cfg, num_last_tokens=0))
    lm_logits, cls_logits, hidden = forward(params, input_ids, seg, pos)
    jax.block_until_ready((lm_logits, cls_logits, hidden))

    assert lm_logits.shape == (Bsz, L, cfg.vocab_size)
    assert cls_logits.shape == (Bsz, 1)
    assert hidden.shape == (Bsz, L, cfg.d_model)
    print("KERNEL_OK")
</pallas_src>

<mosaic_0001>
module attributes {stable_mosaic.version = 11 : i64} {
  func.func @_layernorm_kernel(%arg0: memref<16x32xf32, #tpu.memory_space<vmem>>, %arg1: memref<1x32xf32, #tpu.memory_space<vmem>>, %arg2: memref<1x32xf32, #tpu.memory_space<vmem>>, %arg3: memref<16x32xf32, #tpu.memory_space<vmem>>) attributes {dimension_semantics = [], scalar_prefetch = 0 : i64, scratch_operands = 0 : i64, tpu.core_type = #tpu.core_type<tc>} {
    %c0 = arith.constant 0 : index
    %c0_0 = arith.constant 0 : index
    %0 = vector.load %arg0[%c0, %c0_0] : memref<16x32xf32, #tpu.memory_space<vmem>>, vector<16x32xf32>
    %cst = arith.constant dense<0.000000e+00> : vector<16xf32>
    %1 = vector.multi_reduction <add>, %0, %cst [1] : vector<16x32xf32> to vector<16xf32>
    %2 = vector.shape_cast %1 : vector<16xf32> to vector<16x1xf32>
    %cst_1 = arith.constant 3.200000e+01 : f32
    %3 = vector.broadcast %cst_1 : f32 to vector<16x1xf32>
    %4 = arith.divf %2, %3 : vector<16x1xf32>
    %5 = vector.broadcast %4 : vector<16x1xf32> to vector<16x32xf32>
    %6 = arith.subf %0, %5 : vector<16x32xf32>
    %7 = arith.mulf %6, %6 : vector<16x32xf32>
    %cst_2 = arith.constant dense<0.000000e+00> : vector<16xf32>
    %8 = vector.multi_reduction <add>, %7, %cst_2 [1] : vector<16x32xf32> to vector<16xf32>
    %9 = vector.shape_cast %8 : vector<16xf32> to vector<16x1xf32>
    %cst_3 = arith.constant 3.200000e+01 : f32
    %10 = vector.broadcast %cst_3 : f32 to vector<16x1xf32>
    %11 = arith.divf %9, %10 : vector<16x1xf32>
    %cst_4 = arith.constant 9.99999974E-6 : f32
    %12 = vector.broadcast %cst_4 : f32 to vector<16x1xf32>
    %13 = arith.addf %11, %12 : vector<16x1xf32>
    %14 = math.rsqrt %13 : vector<16x1xf32>
    %15 = vector.broadcast %14 : vector<16x1xf32> to vector<16x32xf32>
    %16 = arith.mulf %6, %15 : vector<16x32xf32>
    %c0_5 = arith.constant 0 : index
    %c0_6 = arith.constant 0 : index
    %17 = vector.load %arg1[%c0_5, %c0_6] : memref<1x32xf32, #tpu.memory_space<vmem>>, vector<1x32xf32>
    %18 = vector.broadcast %17 : vector<1x32xf32> to vector<16x32xf32>
    %19 = arith.mulf %16, %18 : vector<16x32xf32>
    %c0_7 = arith.constant 0 : index
    %c0_8 = arith.constant 0 : index
    %20 = vector.load %arg2[%c0_7, %c0_8] : memref<1x32xf32, #tpu.memory_space<vmem>>, vector<1x32xf32>
    %21 = vector.broadcast %20 : vector<1x32xf32> to vector<16x32xf32>
    %22 = arith.addf %19, %21 : vector<16x32xf32>
    %c0_9 = arith.constant 0 : index
    %c0_10 = arith.constant 0 : index
    %23 = vector.load %arg3[%c0_9, %c0_10] : memref<16x32xf32, #tpu.memory_space<vmem>>, vector<16x32xf32>
    tpu.vector_store %arg3[%c0_9, %c0_10], %22 {strides = array<i32>} : memref<16x32xf32, #tpu.memory_space<vmem>>, vector<16x32xf32>,
    return
  }
}

module attributes {stable_mosaic.version = 11 : i64} {
  func.func @_mamba_block_kernel(%arg0: i32, %arg1: i32, %arg2: memref<1x1x8x32xf32, #tpu.memory_space<vmem>>, %arg3: memref<1x1x8x32xf32, #tpu.memory_space<vmem>>, %arg4: memref<1x1x32xf32, #tpu.memory_space<vmem>>, %arg5: memref<1x32x64xf32, #tpu.memory_space<vmem>>, %arg6: memref<1x32x64xf32, #tpu.memory_space<vmem>>, %arg7: memref<1x4x64xf32, #tpu.memory_space<vmem>>, %arg8: memref<1x1x64xf32, #tpu.memory_space<vmem>>, %arg9: memref<1x64x64xf32, #tpu.memory_space<vmem>>, %arg10: memref<1x1x64xf32, #tpu.memory_space<vmem>>, %arg11: memref<1x16x64xf32, #tpu.memory_space<vmem>>, %arg12: memref<1x16x64xf32, #tpu.memory_space<vmem>>, %arg13: memref<1x16x64xf32, #tpu.memory_space<vmem>>, %arg14: memref<1x1x64xf32, #tpu.memory_space<vmem>>, %arg15: memref<1x64x32xf32, #tpu.memory_space<vmem>>, %arg16: memref<1x1x32xf32, #tpu.memory_space<vmem>>, %arg17: memref<1x1x8x32xf32, #tpu.memory_space<vmem>>, %arg18: memref<1x1x8x32xf32, #tpu.memory_space<vmem>>, %arg19: memref<8x64xf32, #tpu.memory_space<vmem>>) attributes {dimension_semantics = [#tpu.dimension_semantics<parallel>, #tpu.dimension_semantics<parallel>], iteration_bounds = array<i64: 2, 2>, scalar_prefetch = 0 : i64, scratch_operands = 1 : i64, tpu.core_type = #tpu.core_type<tc>, window_params = [{transform_indices = @transform_0, window_bounds = array<i64: 1, 1, 8, 32>}, {transform_indices = @transform_1, window_bounds = array<i64: 1, 1, 8, 32>}, {transform_indices = @transform_2, window_bounds = array<i64: 1, 1, 32>}, {transform_indices = @transform_3, window_bounds = array<i64: 1, 32, 64>}, {transform_indices = @transform_4, window_bounds = array<i64: 1, 32, 64>}, {transform_indices = @transform_5, window_bounds = array<i64: 1, 4, 64>}, {transform_indices = @transform_6, window_bounds = array<i64: 1, 1, 64>}, {transform_indices = @transform_7, window_bounds = array<i64: 1, 64, 64>}, {transform_indices = @transform_8, window_bounds = array<i64: 1, 1, 64>}, {transform_indices = @transform_9, window_bounds = array<i64: 1, 16, 64>}, {transform_indices = @transform_10, window_bounds = array<i64: 1, 16, 64>}, {transform_indices = @transform_11, window_bounds = array<i64: 1, 16, 64>}, {transform_indices = @transform_12, window_bounds = array<i64: 1, 1, 64>}, {transform_indices = @transform_13, window_bounds = array<i64: 1, 64, 32>}, {transform_indices = @transform_14, window_bounds = array<i64: 1, 1, 32>}, {transform_indices = @transform_15, window_bounds = array<i64: 1, 1, 8, 32>}, {transform_indices = @transform_16, window_bounds = array<i64: 1, 1, 8, 32>}]} {
    %c0 = arith.constant 0 : index
    %c0_0 = arith.constant 0 : index
    %c0_1 = arith.constant 0 : index
    %c0_2 = arith.constant 0 : index
    %0 = vector.load %arg2[%c0, %c0_0, %c0_1, %c0_2] : memref<1x1x8x32xf32, #tpu.memory_space<vmem>>, vector<1x1x8x32xf32>
    %1 = vector.shape_cast %0 : vector<1x1x8x32xf32> to vector<8x32xf32>
    %c0_3 = arith.constant 0 : index
    %c0_4 = arith.constant 0 : index
    %c0_5 = arith.constant 0 : index
    %c0_6 = arith.constant 0 : index
    %2 = vector.load %arg3[%c0_3, %c0_4, %c0_5, %c0_6] : memref<1x1x8x32xf32, #tpu.memory_space<vmem>>, vector<1x1x8x32xf32>
    %3 = vector.shape_cast %2 : vector<1x1x8x32xf32> to vector<8x32xf32>
    %4 = arith.addf %1, %3 : vector<8x32xf32>
    %c0_7 = arith.constant 0 : index
    %c0_8 = arith.constant 0 : index
    %c0_9 = arith.constant 0 : index
    %c0_10 = arith.constant 0 : index
    %5 = vector.load %arg18[%c0_7, %c0_8, %c0_9, %c0_10] : memref<1x1x8x32xf32, #tpu.memory_space<vmem>>, vector<1x1x8x32xf32>
    %6 = vector.shape_cast %5 : vector<1x1x8x32xf32> to vector<8x32xf32>
    %7 = vector.shape_cast %4 : vector<8x32xf32> to vector<1x1x8x32xf32>
    tpu.vector_store %arg18[%c0_7, %c0_8, %c0_9, %c0_10], %7 {strides = array<i32>} : memref<1x1x8x32xf32, #tpu.memory_space<vmem>>, vector<1x1x8x32xf32>,
    %8 = arith.mulf %4, %4 : vector<8x32xf32>
    %cst = arith.constant dense<0.000000e+00> : vector<8xf32>
    %9 = vector.multi_reduction <add>, %8, %cst [1] : vector<8x32xf32> to vector<8xf32>
    %10 = vector.shape_cast %9 : vector<8xf32> to vector<8x1xf32>
    %cst_11 = arith.constant 3.200000e+01 : f32
    %11 = vector.broadcast %cst_11 : f32 to vector<8x1xf32>
    %12 = arith.divf %10, %11 : vector<8x1xf32>
    %cst_12 = arith.constant 9.99999974E-6 : f32
    %13 = vector.broadcast %cst_12 : f32 to vector<8x1xf32>
    %14 = arith.addf %12, %13 : vector<8x1xf32>
    %15 = math.rsqrt %14 : vector<8x1xf32>
    %16 = vector.broadcast %15 : vector<8x1xf32> to vector<8x32xf32>
    %17 = arith.mulf %4, %16 : vector<8x32xf32>
    %c0_13 = arith.constant 0 : index
    %c0_14 = arith.constant 0 : index
    %c0_15 = arith.constant 0 : index
    %18 = vector.load %arg4[%c0_13, %c0_14, %c0_15] : memref<1x1x32xf32, #tpu.memory_space<vmem>>, vector<1x1x32xf32>
    %19 = vector.shape_cast %18 : vector<1x1x32xf32> to vector<1x32xf32>
    %20 = vector.broadcast %19 : vector<1x32xf32> to vector<8x32xf32>
    %21 = arith.mulf %17, %20 : vector<8x32xf32>
    %c0_16 = arith.constant 0 : index
    %c0_17 = arith.constant 0 : index
    %c0_18 = arith.constant 0 : index
    %22 = vector.load %arg5[%c0_16, %c0_17, %c0_18] : memref<1x32x64xf32, #tpu.memory_space<vmem>>, vector<1x32x64xf32>
    %23 = vector.shape_cast %22 : vector<1x32x64xf32> to vector<32x64xf32>
    %cst_19 = arith.constant dense<0.000000e+00> : vector<8x64xf32>
    %24 = tpu.matmul %21, %23, %cst_19 {dimension_numbers = #tpu.dot_dimension_numbers<[1], [0], [0], [1], [0, 0, 1, 1], [], []>} : vector<8x32xf32>, vector<32x64xf32>, vector<8x64xf32> -> vector<8x64xf32>
    %c0_20 = arith.constant 0 : index
    %c0_21 = arith.constant 0 : index
    %c0_22 = arith.constant 0 : index
    %25 = vector.load %arg6[%c0_20, %c0_21, %c0_22] : memref<1x32x64xf32, #tpu.memory_space<vmem>>, vector<1x32x64xf32>
    %26 = vector.shape_cast %25 : vector<1x32x64xf32> to vector<32x64xf32>
    %cst_23 = arith.constant dense<0.000000e+00> : vector<8x64xf32>
    %27 = tpu.matmul %21, %26, %cst_23 {dimension_numbers = #tpu.dot_dimension_numbers<[1], [0], [0], [1], [0, 0, 1, 1], [], []>} : vector<8x32xf32>, vector<32x64xf32>, vector<8x64xf32> -> vector<8x64xf32>
    %c0_24 = arith.constant 0 : index
    %c0_25 = arith.constant 0 : index
    %c0_26 = arith.constant 0 : index
    %28 = vector.load %arg7[%c0_24, %c0_25, %c0_26] : memref<1x4x64xf32, #tpu.memory_space<vmem>>, vector<1x4x64xf32>
    %29 = vector.shape_cast %28 : vector<1x4x64xf32> to vector<4x64xf32>
    %30 = tpu.iota {dimensions = array<i32: 0>} : vector<8x8xi32>
    %31 = tpu.iota {dimensions = array<i32: 1>} : vector<8x8xi32>
    %cst_27 = arith.constant 0.000000e+00 : f32
    %32 = vector.broadcast %cst_27 : f32 to vector<8x64xf32>
    %c0_28 = arith.constant 0 : index
    %c0_29 = arith.constant 0 : index
    %c0_30 = arith.constant 0 : index
    %33 = vector.load %arg8[%c0_28, %c0_29, %c0_30] : memref<1x1x64xf32, #tpu.memory_space<vmem>>, vector<1x1x64xf32>
    %34 = vector.shape_cast %33 : vector<1x1x64xf32> to vector<1x64xf32>
    %35 = vector.broadcast %34 : vector<1x64xf32> to vector<8x64xf32>
    %36 = arith.addf %32, %35 : vector<8x64xf32>
    %c3_i32 = arith.constant 3 : i32
    %37 = vector.broadcast %c3_i32 : i32 to vector<8x8xi32>
    %38 = arith.subi %30, %37 : vector<8x8xi32>
    %39 = arith.cmpi eq, %31, %38 : vector<8x8xi32>
    %40 = arith.extui %39 : vector<8x8xi1> to vector<8x8xi32>
    %41 = arith.sitofp %40 : vector<8x8xi32> to vector<8x8xf32>
    %42 = vector.extract_strided_slice %29 {offsets = [0, 0], sizes = [1, 64], strides = [1, 1]} : vector<4x64xf32> to vector<1x64xf32>
    %cst_31 = arith.constant dense<0.000000e+00> : vector<8x64xf32>
    %43 = tpu.matmul %41, %24, %cst_31 {dimension_numbers = #tpu.dot_dimension_numbers<[1], [0], [0], [1], [0, 0, 1, 1], [], []>} : vector<8x8xf32>, vector<8x64xf32>, vector<8x64xf32> -> vector<8x64xf32>
    %44 = vector.broadcast %42 : vector<1x64xf32> to vector<8x64xf32>
    %45 = arith.mulf %44, %43 : vector<8x64xf32>
    %46 = arith.addf %36, %45 : vector<8x64xf32>
    %c2_i32 = arith.constant 2 : i32
    %47 = vector.broadcast %c2_i32 : i32 to vector<8x8xi32>
    %48 = arith.subi %30, %47 : vector<8x8xi32>
    %49 = arith.cmpi eq, %31, %48 : vector<8x8xi32>
    %50 = arith.extui %49 : vector<8x8xi1> to vector<8x8xi32>
    %51 = arith.sitofp %50 : vector<8x8xi32> to vector<8x8xf32>
    %52 = vector.extract_strided_slice %29 {offsets = [1, 0], sizes = [1, 64], strides = [1, 1]} : vector<4x64xf32> to vector<1x64xf32>
    %cst_32 = arith.constant dense<0.000000e+00> : vector<8x64xf32>
    %53 = tpu.matmul %51, %24, %cst_32 {dimension_numbers = #tpu.dot_dimension_numbers<[1], [0], [0], [1], [0, 0, 1, 1], [], []>} : vector<8x8xf32>, vector<8x64xf32>, vector<8x64xf32> -> vector<8x64xf32>
    %54 = vector.broadcast %52 : vector<1x64xf32> to vector<8x64xf32>
    %55 = arith.mulf %54, %53 : vector<8x64xf32>
    %56 = arith.addf %46, %55 : vector<8x64xf32>
    %c1_i32 = arith.constant 1 : i32
    %57 = vector.broadcast %c1_i32 : i32 to vector<8x8xi32>
    %58 = arith.subi %30, %57 : vector<8x8xi32>
    %59 = arith.cmpi eq, %31, %58 : vector<8x8xi32>
    %60 = arith.extui %59 : vector<8x8xi1> to vector<8x8xi32>
    %61 = arith.sitofp %60 : vector<8x8xi32> to vector<8x8xf32>
    %62 = vector.extract_strided_slice %29 {offsets = [2, 0], sizes = [1, 64], strides = [1, 1]} : vector<4x64xf32> to vector<1x64xf32>
    %cst_33 = arith.constant dense<0.000000e+00> : vector<8x64xf32>
    %63 = tpu.matmul %61, %24, %cst_33 {dimension_numbers = #tpu.dot_dimension_numbers<[1], [0], [0], [1], [0, 0, 1, 1], [], []>} : vector<8x8xf32>, vector<8x64xf32>, vector<8x64xf32> -> vector<8x64xf32>
    %64 = vector.broadcast %62 : vector<1x64xf32> to vector<8x64xf32>
    %65 = arith.mulf %64, %63 : vector<8x64xf32>
    %66 = arith.addf %56, %65 : vector<8x64xf32>
    %67 = vector.extract_strided_slice %29 {offsets = [3, 0], sizes = [1, 64], strides = [1, 1]} : vector<4x64xf32> to vector<1x64xf32>
    %68 = vector.broadcast %67 : vector<1x64xf32> to vector<8x64xf32>
    %69 = arith.mulf %68, %24 : vector<8x64xf32>
    %70 = arith.addf %66, %69 : vector<8x64xf32>
    %cst_34 = arith.constant 0.000000e+00 : f32
    %71 = vector.broadcast %cst_34 : f32 to vector<8x64xf32>
    %72 = arith.subf %71, %70 : vector<8x64xf32>
    %73 = math.exp %72 : vector<8x64xf32>
    %cst_35 = arith.constant 1.000000e+00 : f32
    %74 = vector.broadcast %cst_35 : f32 to vector<8x64xf32>
    %75 = arith.addf %74, %73 : vector<8x64xf32>
    %cst_36 = arith.constant 1.000000e+00 : f32
    %76 = vector.broadcast %cst_36 : f32 to vector<8x64xf32>
    %77 = arith.divf %76, %75 : vector<8x64xf32>
    %78 = arith.mulf %70, %77 : vector<8x64xf32>
    %c0_37 = arith.constant 0 : index
    %c0_38 = arith.constant 0 : index
    %c0_39 = arith.constant 0 : index
    %79 = vector.load %arg9[%c0_37, %c0_38, %c0_39] : memref<1x64x64xf32, #tpu.memory_space<vmem>>, vector<1x64x64xf32>
    %80 = vector.shape_cast %79 : vector<1x64x64xf32> to vector<64x64xf32>
    %cst_40 = arith.constant dense<0.000000e+00> : vector<8x64xf32>
    %81 = tpu.matmul %78, %80, %cst_40 {dimension_numbers = #tpu.dot_dimension_numbers<[1], [0], [0], [1], [0, 0, 1, 1], [], []>} : vector<8x64xf32>, vector<64x64xf32>, vector<8x64xf32> -> vector<8x64xf32>
    %c0_41 = arith.constant 0 : index
    %c0_42 = arith.constant 0 : index
    %c0_43 = arith.constant 0 : index
    %82 = vector.load %arg10[%c0_41, %c0_42, %c0_43] : memref<1x1x64xf32, #tpu.memory_space<vmem>>, vector<1x1x64xf32>
    %83 = vector.shape_cast %82 : vector<1x1x64xf32> to vector<1x64xf32>
    %84 = vector.broadcast %83 : vector<1x64xf32> to vector<8x64xf32>
    %85 = arith.addf %81, %84 : vector<8x64xf32>
    %cst_44 = arith.constant 0.000000e+00 : f32
    %86 = vector.broadcast %cst_44 : f32 to vector<8x64xf32>
    %87 = arith.maximumf %85, %86 : vector<8x64xf32>
    %88 = math.absf %85 : vector<8x64xf32>
    %cst_45 = arith.constant 0.000000e+00 : f32
    %89 = vector.broadcast %cst_45 : f32 to vector<8x64xf32>
    %90 = arith.subf %89, %88 : vector<8x64xf32>
    %91 = math.exp %90 : vector<8x64xf32>
    %cst_46 = arith.constant 1.000000e+00 : f32
    %92 = vector.broadcast %cst_46 : f32 to vector<8x64xf32>
    %93 = arith.addf %92, %91 : vector<8x64xf32>
    %94 = math.log %93 : vector<8x64xf32>
    %95 = arith.addf %87, %94 : vector<8x64xf32>
    %c0_47 = arith.constant 0 : index
    %c0_48 = arith.constant 0 : index
    %c0_49 = arith.constant 0 : index
    %96 = vector.load %arg12[%c0_47, %c0_48, %c0_49] : memref<1x16x64xf32, #tpu.memory_space<vmem>>, vector<1x16x64xf32>
    %97 = vector.shape_cast %96 : vector<1x16x64xf32> to vector<16x64xf32>
    %cst_50 = arith.constant dense<0.000000e+00> : vector<8x16xf32>
    %98 = tpu.matmul %78, %97, %cst_50 {dimension_numbers = #tpu.dot_dimension_numbers<[1], [1], [0], [0], [0, 0, 1, 0], [], []>} : vector<8x64xf32>, vector<16x64xf32>, vector<8x16xf32> -> vector<8x16xf32>
    %c0_51 = arith.constant 0 : index
    %c0_52 = arith.constant 0 : index
    %c0_53 = arith.constant 0 : index
    %99 = vector.load %arg13[%c0_51, %c0_52, %c0_53] : memref<1x16x64xf32, #tpu.memory_space<vmem>>, vector<1x16x64xf32>
    %100 = vector.shape_cast %99 : vector<1x16x64xf32> to vector<16x64xf32>
    %c0_54 = arith.constant 0 : index
    %c0_55 = arith.constant 0 : index
    %c0_56 = arith.constant 0 : index
    %101 = vector.load %arg11[%c0_54, %c0_55, %c0_56] : memref<1x16x64xf32, #tpu.memory_space<vmem>>, vector<1x16x64xf32>
    %102 = vector.shape_cast %101 : vector<1x16x64xf32> to vector<16x64xf32>
    %103 = arith.mulf %95, %78 : vector<8x64xf32>
    %cst_57 = arith.constant 0.000000e+00 : f32
    %104 = vector.broadcast %cst_57 : f32 to vector<16x64xf32>
    %105 = vector.extract_strided_slice %95 {offsets = [0, 0], sizes = [1, 64], strides = [1, 1]} : vector<8x64xf32> to vector<1x64xf32>
    %106 = vector.extract_strided_slice %78 {offsets = [0, 0], sizes = [1, 64], strides = [1, 1]} : vector<8x64xf32> to vector<1x64xf32>
    %cst_58 = arith.constant dense<0.000000e+00> : vector<16x1xf32>
    %107 = tpu.matmul %102, %106, %cst_58 {dimension_numbers = #tpu.dot_dimension_numbers<[1], [1], [0], [0], [0, 0, 1, 0], [], []>} : vector<16x64xf32>, vector<1x64xf32>, vector<16x1xf32> -> vector<16x1xf32>
    %108 = vector.broadcast %105 : vector<1x64xf32> to vector<16x64xf32>
    %109 = arith.mulf %108, %100 : vector<16x64xf32>
    %110 = math.exp %109 : vector<16x64xf32>
    %111 = arith.mulf %110, %104 : vector<16x64xf32>
    %112 = vector.extract_strided_slice %103 {offsets = [0, 0], sizes = [1, 64], strides = [1, 1]} : vector<8x64xf32> to vector<1x64xf32>
    %113 = vector.broadcast %107 : vector<16x1xf32> to vector<16x64xf32>
    %114 = vector.broadcast %112 : vector<1x64xf32> to vector<16x64xf32>
    %115 = arith.mulf %113, %114 : vector<16x64xf32>
    %116 = arith.addf %111, %115 : vector<16x64xf32>
    %117 = vector.extract_strided_slice %98 {offsets = [0, 0], sizes = [1, 16], strides = [1, 1]} : vector<8x16xf32> to vector<1x16xf32>
    %cst_59 = arith.constant dense<0.000000e+00> : vector<1x64xf32>
    %118 = tpu.matmul %117, %116, %cst_59 {dimension_numbers = #tpu.dot_dimension_numbers<[1], [0], [0], [1], [0, 0, 1, 1], [], []>} : vector<1x16xf32>, vector<16x64xf32>, vector<1x64xf32> -> vector<1x64xf32>
    %c0_60 = arith.constant 0 : index
    %c0_61 = arith.constant 0 : index
    %119 = vector.load %arg19[%c0_60, %c0_61] : memref<8x64xf32, #tpu.memory_space<vmem>>, vector<1x64xf32>
    tpu.vector_store %arg19[%c0_60, %c0_61], %118 {strides = array<i32>} : memref<8x64xf32, #tpu.memory_space<vmem>>, vector<1x64xf32>,
    %120 = vector.extract_strided_slice %95 {offsets = [1, 0], sizes = [1, 64], strides = [1, 1]} : vector<8x64xf32> to vector<1x64xf32>
    %121 = vector.extract_strided_slice %78 {offsets = [1, 0], sizes = [1, 64], strides = [1, 1]} : vector<8x64xf32> to vector<1x64xf32>
    %cst_62 = arith.constant dense<0.000000e+00> : vector<16x1xf32>
    %122 = tpu.matmul %102, %121, %cst_62 {dimension_numbers = #tpu.dot_dimension_numbers<[1], [1], [0], [0], [0, 0, 1, 0], [], []>} : vector<16x64xf32>, vector<1x64xf32>, vector<16x1xf32> -> vector<16x1xf32>
    %123 = vector.broadcast %120 : vector<1x64xf32> to vector<16x64xf32>
    %124 = arith.mulf %123, %100 : vector<16x64xf32>
    %125 = math.exp %124 : vector<16x64xf32>
    %126 = arith.mulf %125, %116 : vector<16x64xf32>
    %127 = vector.extract_strided_slice %103 {offsets = [1, 0], sizes = [1, 64], strides = [1, 1]} : vector<8x64xf32> to vector<1x64xf32>
    %128 = vector.broadcast %122 : vector<16x1xf32> to vector<16x64xf32>
    %129 = vector.broadcast %127 : vector<1x64xf32> to vector<16x64xf32>
    %130 = arith.mulf %128, %129 : vector<16x64xf32>
    %131 = arith.addf %126, %130 : vector<16x64xf32>
    %132 = vector.extract_strided_slice %98 {offsets = [1, 0], sizes = [1, 16], strides = [1, 1]} : vector<8x16xf32> to vector<1x16xf32>
    %cst_63 = arith.constant dense<0.000000e+00> : vector<1x64xf32>
    %133 = tpu.matmul %132, %131, %cst_63 {dimension_numbers = #tpu.dot_dimension_numbers<[1], [0], [0], [1], [0, 0, 1, 1], [], []>} : vector<1x16xf32>, vector<16x64xf32>, vector<1x64xf32> -> vector<1x64xf32>
    %c1 = arith.constant 1 : index
    %c0_64 = arith.constant 0 : index
    %134 = vector.load %arg19[%c1, %c0_64] : memref<8x64xf32, #tpu.memory_space<vmem>>, vector<1x64xf32>
    tpu.vector_store %arg19[%c1, %c0_64], %133 {strides = array<i32>} : memref<8x64xf32, #tpu.memory_space<vmem>>, vector<1x64xf32>,
    %135 = vector.extract_strided_slice %95 {offsets = [2, 0], sizes = [1, 64], strides = [1, 1]} : vector<8x64xf32> to vector<1x64xf32>
    %136 = vector.extract_strided_slice %78 {offsets = [2, 0], sizes = [1, 64], strides = [1, 1]} : vector<8x64xf32> to vector<1x64xf32>
    %cst_65 = arith.constant dense<0.000000e+00> : vector<16x1xf32>
    %137 = tpu.matmul %102, %136, %cst_65 {dimension_numbers = #tpu.dot_dimension_numbers<[1], [1], [0], [0], [0, 0, 1, 0], [], []>} : vector<16x64xf32>, vector<1x64xf32>, vector<16x1xf32> -> vector<16x1xf32>
    %138 = vector.broadcast %135 : vector<1x64xf32> to vector<16x64xf32>
    %139 = arith.mulf %138, %100 : vector<16x64xf32>
    %140 = math.exp %139 : vector<16x64xf32>
    %141 = arith.mulf %140, %131 : vector<16x64xf32>
    %142 = vector.extract_strided_slice %103 {offsets = [2, 0], sizes = [1, 64], strides = [1, 1]} : vector<8x64xf32> to vector<1x64xf32>
    %143 = vector.broadcast %137 : vector<16x1xf32> to vector<16x64xf32>
    %144 = vector.broadcast %142 : vector<1x64xf32> to vector<16x64xf32>
    %145 = arith.mulf %143, %144 : vector<16x64xf32>
    %146 = arith.addf %141, %145 : vector<16x64xf32>
    %147 = vector.extract_strided_slice %98 {offsets = [2, 0], sizes = [1, 16], strides = [1, 1]} : vector<8x16xf32> to vector<1x16xf32>
    %cst_66 = arith.constant dense<0.000000e+00> : vector<1x64xf32>
    %148 = tpu.matmul %147, %146, %cst_66 {dimension_numbers = #tpu.dot_dimension_numbers<[1], [0], [0], [1], [0, 0, 1, 1], [], []>} : vector<1x16xf32>, vector<16x64xf32>, vector<1x64xf32> -> vector<1x64xf32>
    %c2 = arith.constant 2 : index
    %c0_67 = arith.constant 0 : index
    %149 = vector.load %arg19[%c2, %c0_67] : memref<8x64xf32, #tpu.memory_space<vmem>>, vector<1x64xf32>
    tpu.vector_store %arg19[%c2, %c0_67], %148 {strides = array<i32>} : memref<8x64xf32, #tpu.memory_space<vmem>>, vector<1x64xf32>,
    %150 = vector.extract_strided_slice %95 {offsets = [3, 0], sizes = [1, 64], strides = [1, 1]} : vector<8x64xf32> to vector<1x64xf32>
    %151 = vector.extract_strided_slice %78 {offsets = [3, 0], sizes = [1, 64], strides = [1, 1]} : vector<8x64xf32> to vector<1x64xf32>
    %cst_68 = arith.constant dense<0.000000e+00> : vector<16x1xf32>
    %152 = tpu.matmul %102, %151, %cst_68 {dimension_numbers = #tpu.dot_dimension_numbers<[1], [1], [0], [0], [0, 0, 1, 0], [], []>} : vector<16x64xf32>, vector<1x64xf32>, vector<16x1xf32> -> vector<16x1xf32>
    %153 = vector.broadcast %150 : vector<1x64xf32> to vector<16x64xf32>
    %154 = arith.mulf %153, %100 : vector<16x64xf32>
    %155 = math.exp %154 : vector<16x64xf32>
    %156 = arith.mulf %155, %146 : vector<16x64xf32>
    %157 = vector.extract_strided_slice %103 {offsets = [3, 0], sizes = [1, 64], strides = [1, 1]} : vector<8x64xf32> to vector<1x64xf32>
    %158 = vector.broadcast %152 : vector<16x1xf32> to vector<16x64xf32>
    %159 = vector.broadcast %157 : vector<1x64xf32> to vector<16x64xf32>
    %160 = arith.mulf %158, %159 : vector<16x64xf32>
    %161 = arith.addf %156, %160 : vector<16x64xf32>
    %162 = vector.extract_strided_slice %98 {offsets = [3, 0], sizes = [1, 16], strides = [1, 1]} : vector<8x16xf32> to vector<1x16xf32>
    %cst_69 = arith.constant dense<0.000000e+00> : vector<1x64xf32>
    %163 = tpu.matmul %162, %161, %cst_69 {dimension_numbers = #tpu.dot_dimension_numbers<[1], [0], [0], [1], [0, 0, 1, 1], [], []>} : vector<1x16xf32>, vector<16x64xf32>, vector<1x64xf32> -> vector<1x64xf32>
    %c3 = arith.constant 3 : index
    %c0_70 = arith.constant 0 : index
    %164 = vector.load %arg19[%c3, %c0_70] : memref<8x64xf32, #tpu.memory_space<vmem>>, vector<1x64xf32>
    tpu.vector_store %arg19[%c3, %c0_70], %163 {strides = array<i32>} : memref<8x64xf32, #tpu.memory_space<vmem>>, vector<1x64xf32>,
    %165 = vector.extract_strided_slice %95 {offsets = [4, 0], sizes = [1, 64], strides = [1, 1]} : vector<8x64xf32> to vector<1x64xf32>
    %166 = vector.extract_strided_slice %78 {offsets = [4, 0], sizes = [1, 64], strides = [1, 1]} : vector<8x64xf32> to vector<1x64xf32>
    %cst_71 = arith.constant dense<0.000000e+00> : vector<16x1xf32>
    %167 = tpu.matmul %102, %166, %cst_71 {dimension_numbers = #tpu.dot_dimension_numbers<[1], [1], [0], [0], [0, 0, 1, 0], [], []>} : vector<16x64xf32>, vector<1x64xf32>, vector<16x1xf32> -> vector<16x1xf32>
    %168 = vector.broadcast %165 : vector<1x64xf32> to vector<16x64xf32>
    %169 = arith.mulf %168, %100 : vector<16x64xf32>
    %170 = math.exp %169 : vector<16x64xf32>
    %171 = arith.mulf %170, %161 : vector<16x64xf32>
    %172 = vector.extract_strided_slice %103 {offsets = [4, 0], sizes = [1, 64], strides = [1, 1]} : vector<8x64xf32> to vector<1x64xf32>
    %173 = vector.broadcast %167 : vector<16x1xf32> to vector<16x64xf32>
    %174 = vector.broadcast %172 : vector<1x64xf32> to vector<16x64xf32>
    %175 = arith.mulf %173, %174 : vector<16x64xf32>
    %176 = arith.addf %171, %175 : vector<16x64xf32>
    %177 = vector.extract_strided_slice %98 {offsets = [4, 0], sizes = [1, 16], strides = [1, 1]} : vector<8x16xf32> to vector<1x16xf32>
    %cst_72 = arith.constant dense<0.000000e+00> : vector<1x64xf32>
    %178 = tpu.matmul %177, %176, %cst_72 {dimension_numbers = #tpu.dot_dimension_numbers<[1], [0], [0], [1], [0, 0, 1, 1], [], []>} : vector<1x16xf32>, vector<16x64xf32>, vector<1x64xf32> -> vector<1x64xf32>
    %c4 = arith.constant 4 : index
    %c0_73 = arith.constant 0 : index
    %179 = vector.load %arg19[%c4, %c0_73] : memref<8x64xf32, #tpu.memory_space<vmem>>, vector<1x64xf32>
    tpu.vector_store %arg19[%c4, %c0_73], %178 {strides = array<i32>} : memref<8x64xf32, #tpu.memory_space<vmem>>, vector<1x64xf32>,
    %180 = vector.extract_strided_slice %95 {offsets = [5, 0], sizes = [1, 64], strides = [1, 1]} : vector<8x64xf32> to vector<1x64xf32>
    %181 = vector.extract_strided_slice %78 {offsets = [5, 0], sizes = [1, 64], strides = [1, 1]} : vector<8x64xf32> to vector<1x64xf32>
    %cst_74 = arith.constant dense<0.000000e+00> : vector<16x1xf32>
    %182 = tpu.matmul %102, %181, %cst_74 {dimension_numbers = #tpu.dot_dimension_numbers<[1], [1], [0], [0], [0, 0, 1, 0], [], []>} : vector<16x64xf32>, vector<1x64xf32>, vector<16x1xf32> -> vector<16x1xf32>
    %183 = vector.broadcast %180 : vector<1x64xf32> to vector<16x64xf32>
    %184 = arith.mulf %183, %100 : vector<16x64xf32>
    %185 = math.exp %184 : vector<16x64xf32>
    %186 = arith.mulf %185, %176 : vector<16x64xf32>
    %187 = vector.extract_strided_slice %103 {offsets = [5, 0], sizes = [1, 64], strides = [1, 1]} : vector<8x64xf32> to vector<1x64xf32>
    %188 = vector.broadcast %182 : vector<16x1xf32> to vector<16x64xf32>
    %189 = vector.broadcast %187 : vector<1x64xf32> to vector<16x64xf32>
    %190 = arith.mulf %188, %189 : vector<16x64xf32>
    %191 = arith.addf %186, %190 : vector<16x64xf32>
    %192 = vector.extract_strided_slice %98 {offsets = [5, 0], sizes = [1, 16], strides = [1, 1]} : vector<8x16xf32> to vector<1x16xf32>
    %cst_75 = arith.constant dense<0.000000e+00> : vector<1x64xf32>
    %193 = tpu.matmul %192, %191, %cst_75 {dimension_numbers = #tpu.dot_dimension_numbers<[1], [0], [0], [1], [0, 0, 1, 1], [], []>} : vector<1x16xf32>, vector<16x64xf32>, vector<1x64xf32> -> vector<1x64xf32>
    %c5 = arith.constant 5 : index
    %c0_76 = arith.constant 0 : index
    %194 = vector.load %arg19[%c5, %c0_76] : memref<8x64xf32, #tpu.memory_space<vmem>>, vector<1x64xf32>
    tpu.vector_store %arg19[%c5, %c0_76], %193 {strides = array<i32>} : memref<8x64xf32, #tpu.memory_space<vmem>>, vector<1x64xf32>,
    %195 = vector.extract_strided_slice %95 {offsets = [6, 0], sizes = [1, 64], strides = [1, 1]} : vector<8x64xf32> to vector<1x64xf32>
    %196 = vector.extract_strided_slice %78 {offsets = [6, 0], sizes = [1, 64], strides = [1, 1]} : vector<8x64xf32> to vector<1x64xf32>
    %cst_77 = arith.constant dense<0.000000e+00> : vector<16x1xf32>
    %197 = tpu.matmul %102, %196, %cst_77 {dimension_numbers = #tpu.dot_dimension_numbers<[1], [1], [0], [0], [0, 0, 1, 0], [], []>} : vector<16x64xf32>, vector<1x64xf32>, vector<16x1xf32> -> vector<16x1xf32>
    %198 = vector.broadcast %195 : vector<1x64xf32> to vector<16x64xf32>
    %199 = arith.mulf %198, %100 : vector<16x64xf32>
    %200 = math.exp %199 : vector<16x64xf32>
    %201 = arith.mulf %200, %191 : vector<16x64xf32>
    %202 = vector.extract_strided_slice %103 {offsets = [6, 0], sizes = [1, 64], strides = [1, 1]} : vector<8x64xf32> to vector<1x64xf32>
    %203 = vector.broadcast %197 : vector<16x1xf32> to vector<16x64xf32>
    %204 = vector.broadcast %202 : vector<1x64xf32> to vector<16x64xf32>
    %205 = arith.mulf %203, %204 : vector<16x64xf32>
    %206 = arith.addf %201, %205 : vector<16x64xf32>
    %207 = vector.extract_strided_slice %98 {offsets = [6, 0], sizes = [1, 16], strides = [1, 1]} : vector<8x16xf32> to vector<1x16xf32>
    %cst_78 = arith.constant dense<0.000000e+00> : vector<1x64xf32>
    %208 = tpu.matmul %207, %206, %cst_78 {dimension_numbers = #tpu.dot_dimension_numbers<[1], [0], [0], [1], [0, 0, 1, 1], [], []>} : vector<1x16xf32>, vector<16x64xf32>, vector<1x64xf32> -> vector<1x64xf32>
    %c6 = arith.constant 6 : index
    %c0_79 = arith.constant 0 : index
    %209 = vector.load %arg19[%c6, %c0_79] : memref<8x64xf32, #tpu.memory_space<vmem>>, vector<1x64xf32>
    tpu.vector_store %arg19[%c6, %c0_79], %208 {strides = array<i32>} : memref<8x64xf32, #tpu.memory_space<vmem>>, vector<1x64xf32>,
    %210 = vector.extract_strided_slice %95 {offsets = [7, 0], sizes = [1, 64], strides = [1, 1]} : vector<8x64xf32> to vector<1x64xf32>
    %211 = vector.extract_strided_slice %78 {offsets = [7, 0], sizes = [1, 64], strides = [1, 1]} : vector<8x64xf32> to vector<1x64xf32>
    %cst_80 = arith.constant dense<0.000000e+00> : vector<16x1xf32>
    %212 = tpu.matmul %102, %211, %cst_80 {dimension_numbers = #tpu.dot_dimension_numbers<[1], [1], [0], [0], [0, 0, 1, 0], [], []>} : vector<16x64xf32>, vector<1x64xf32>, vector<16x1xf32> -> vector<16x1xf32>
    %213 = vector.broadcast %210 : vector<1x64xf32> to vector<16x64xf32>
    %214 = arith.mulf %213, %100 : vector<16x64xf32>
    %215 = math.exp %214 : vector<16x64xf32>
    %216 = arith.mulf %215, %206 : vector<16x64xf32>
    %217 = vector.extract_strided_slice %103 {offsets = [7, 0], sizes = [1, 64], strides = [1, 1]} : vector<8x64xf32> to vector<1x64xf32>
    %218 = vector.broadcast %212 : vector<16x1xf32> to vector<16x64xf32>
    %219 = vector.broadcast %217 : vector<1x64xf32> to vector<16x64xf32>
    %220 = arith.mulf %218, %219 : vector<16x64xf32>
    %221 = arith.addf %216, %220 : vector<16x64xf32>
    %222 = vector.extract_strided_slice %98 {offsets = [7, 0], sizes = [1, 16], strides = [1, 1]} : vector<8x16xf32> to vector<1x16xf32>
    %cst_81 = arith.constant dense<0.000000e+00> : vector<1x64xf32>
    %223 = tpu.matmul %222, %221, %cst_81 {dimension_numbers = #tpu.dot_dimension_numbers<[1], [0], [0], [1], [0, 0, 1, 1], [], []>} : vector<1x16xf32>, vector<16x64xf32>, vector<1x64xf32> -> vector<1x64xf32>
    %c7 = arith.constant 7 : index
    %c0_82 = arith.constant 0 : index
    %224 = vector.load %arg19[%c7, %c0_82] : memref<8x64xf32, #tpu.memory_space<vmem>>, vector<1x64xf32>
    tpu.vector_store %arg19[%c7, %c0_82], %223 {strides = array<i32>} : memref<8x64xf32, #tpu.memory_space<vmem>>, vector<1x64xf32>,
    %c0_83 = arith.constant 0 : index
    %c0_84 = arith.constant 0 : index
    %225 = vector.load %arg19[%c0_83, %c0_84] : memref<8x64xf32, #tpu.memory_space<vmem>>, vector<8x64xf32>
    %c0_85 = arith.constant 0 : index
    %c0_86 = arith.constant 0 : index
    %c0_87 = arith.constant 0 : index
    %226 = vector.load %arg14[%c0_85, %c0_86, %c0_87] : memref<1x1x64xf32, #tpu.memory_space<vmem>>, vector<1x1x64xf32>
    %227 = vector.shape_cast %226 : vector<1x1x64xf32> to vector<1x64xf32>
    %228 = vector.broadcast %227 : vector<1x64xf32> to vector<8x64xf32>
    %229 = arith.mulf %228, %78 : vector<8x64xf32>
    %230 = arith.addf %225, %229 : vector<8x64xf32>
    %cst_88 = arith.constant 0.000000e+00 : f32
    %231 = vector.broadcast %cst_88 : f32 to vector<8x64xf32>
    %232 = arith.subf %231, %27 : vector<8x64xf32>
    %233 = math.exp %232 : vector<8x64xf32>
    %cst_89 = arith.constant 1.000000e+00 : f32
    %234 = vector.broadcast %cst_89 : f32 to vector<8x64xf32>
    %235 = arith.addf %234, %233 : vector<8x64xf32>
    %cst_90 = arith.constant 1.000000e+00 : f32
    %236 = vector.broadcast %cst_90 : f32 to vector<8x64xf32>
    %237 = arith.divf %236, %235 : vector<8x64xf32>
    %238 = arith.mulf %27, %237 : vector<8x64xf32>
    %239 = arith.mulf %230, %238 : vector<8x64xf32>
    %c0_91 = arith.constant 0 : index
    %c0_92 = arith.constant 0 : index
    %c0_93 = arith.constant 0 : index
    %240 = vector.load %arg15[%c0_91, %c0_92, %c0_93] : memref<1x64x32xf32, #tpu.memory_space<vmem>>, vector<1x64x32xf32>
    %241 = vector.shape_cast %240 : vector<1x64x32xf32> to vector<64x32xf32>
    %cst_94 = arith.constant dense<0.000000e+00> : vector<8x32xf32>
    %242 = tpu.matmul %239, %241, %cst_94 {dimension_numbers = #tpu.dot_dimension_numbers<[1], [0], [0], [1], [0, 0, 1, 1], [], []>} : vector<8x64xf32>, vector<64x32xf32>, vector<8x32xf32> -> vector<8x32xf32>
    %c0_95 = arith.constant 0 : index
    %c0_96 = arith.constant 0 : index
    %c0_97 = arith.constant 0 : index
    %243 = vector.load %arg16[%c0_95, %c0_96, %c0_97] : memref<1x1x32xf32, #tpu.memory_space<vmem>>, vector<1x1x32xf32>
    %244 = vector.shape_cast %243 : vector<1x1x32xf32> to vector<1x32xf32>
    %245 = vector.broadcast %244 : vector<1x32xf32> to vector<8x32xf32>
    %246 = arith.addf %242, %245 : vector<8x32xf32>
    %c0_98 = arith.constant 0 : index
    %c0_99 = arith.constant 0 : index
    %c0_100 = arith.constant 0 : index
    %c0_101 = arith.constant 0 : index
    %247 = vector.load %arg17[%c0_98, %c0_99, %c0_100, %c0_101] : memref<1x1x8x32xf32, #tpu.memory_space<vmem>>, vector<1x1x8x32xf32>
    %248 = vector.shape_cast %247 : vector<1x1x8x32xf32> to vector<8x32xf32>
    %249 = vector.shape_cast %246 : vector<8x32xf32> to vector<1x1x8x32xf32>
    tpu.vector_store %arg17[%c0_98, %c0_99, %c0_100, %c0_101], %249 {strides = array<i32>} : memref<1x1x8x32xf32, #tpu.memory_space<vmem>>, vector<1x1x8x32xf32>,
    return
  }
  func.func @transform_0(%arg0: i32, %arg1: i32) -> (i32, i32, i32, i32) {
    %c0_i32 = arith.constant 0 : i32
    %c0_i32_0 = arith.constant 0 : i32
    %c0_i32_1 = arith.constant 0 : i32
    return %arg0, %arg1, %c0_i32, %c0_i32_0 : i32, i32, i32, i32
  }
  func.func @transform_1(%arg0: i32, %arg1: i32) -> (i32, i32, i32, i32) {
    %c0_i32 = arith.constant 0 : i32
    %c0_i32_0 = arith.constant 0 : i32
    %c0_i32_1 = arith.constant 0 : i32
    return %arg0, %arg1, %c0_i32, %c0_i32_0 : i32, i32, i32, i32
  }
  func.func @transform_2(%arg0: i32, %arg1: i32) -> (i32, i32, i32) {
    %c0_i32 = arith.constant 0 : i32
    %c0_i32_0 = arith.constant 0 : i32
    %c0_i32_1 = arith.constant 0 : i32
    return %arg0, %c0_i32, %c0_i32_0 : i32, i32, i32
  }
  func.func @transform_3(%arg0: i32, %arg1: i32) -> (i32, i32, i32) {
    %c0_i32 = arith.constant 0 : i32
    %c0_i32_0 = arith.constant 0 : i32
    %c0_i32_1 = arith.constant 0 : i32
    return %arg0, %c0_i32, %c0_i32_0 : i32, i32, i32
  }
  func.func @transform_4(%arg0: i32, %arg1: i32) -> (i32, i32, i32) {
    %c0_i32 = arith.constant 0 : i32
    %c0_i32_0 = arith.constant 0 : i32
    %c0_i32_1 = arith.constant 0 : i32
    return %arg0, %c0_i32, %c0_i32_0 : i32, i32, i32
  }
  func.func @transform_5(%arg0: i32, %arg1: i32) -> (i32, i32, i32) {
    %c0_i32 = arith.constant 0 : i32
    %c0_i32_0 = arith.constant 0 : i32
    %c0_i32_1 = arith.constant 0 : i32
    return %arg0, %c0_i32, %c0_i32_0 : i32, i32, i32
  }
  func.func @transform_6(%arg0: i32, %arg1: i32) -> (i32, i32, i32) {
    %c0_i32 = arith.constant 0 : i32
    %c0_i32_0 = arith.constant 0 : i32
    %c0_i32_1 = arith.constant 0 : i32
    return %arg0, %c0_i32, %c0_i32_0 : i32, i32, i32
  }
  func.func @transform_7(%arg0: i32, %arg1: i32) -> (i32, i32, i32) {
    %c0_i32 = arith.constant 0 : i32
    %c0_i32_0 = arith.constant 0 : i32
    %c0_i32_1 = arith.constant 0 : i32
    return %arg0, %c0_i32, %c0_i32_0 : i32, i32, i32
  }
  func.func @transform_8(%arg0: i32, %arg1: i32) -> (i32, i32, i32) {
    %c0_i32 = arith.constant 0 : i32
    %c0_i32_0 = arith.constant 0 : i32
    %c0_i32_1 = arith.constant 0 : i32
    return %arg0, %c0_i32, %c0_i32_0 : i32, i32, i32
  }
  func.func @transform_9(%arg0: i32, %arg1: i32) -> (i32, i32, i32) {
    %c0_i32 = arith.constant 0 : i32
    %c0_i32_0 = arith.constant 0 : i32
    %c0_i32_1 = arith.constant 0 : i32
    return %arg0, %c0_i32, %c0_i32_0 : i32, i32, i32
  }
  func.func @transform_10(%arg0: i32, %arg1: i32) -> (i32, i32, i32) {
    %c0_i32 = arith.constant 0 : i32
    %c0_i32_0 = arith.constant 0 : i32
    %c0_i32_1 = arith.constant 0 : i32
    return %arg0, %c0_i32, %c0_i32_0 : i32, i32, i32
  }
  func.func @transform_11(%arg0: i32, %arg1: i32) -> (i32, i32, i32) {
    %c0_i32 = arith.constant 0 : i32
    %c0_i32_0 = arith.constant 0 : i32
    %c0_i32_1 = arith.constant 0 : i32
    return %arg0, %c0_i32, %c0_i32_0 : i32, i32, i32
  }
  func.func @transform_12(%arg0: i32, %arg1: i32) -> (i32, i32, i32) {
    %c0_i32 = arith.constant 0 : i32
    %c0_i32_0 = arith.constant 0 : i32
    %c0_i32_1 = arith.constant 0 : i32
    return %arg0, %c0_i32, %c0_i32_0 : i32, i32, i32
  }
  func.func @transform_13(%arg0: i32, %arg1: i32) -> (i32, i32, i32) {
    %c0_i32 = arith.constant 0 : i32
    %c0_i32_0 = arith.constant 0 : i32
    %c0_i32_1 = arith.constant 0 : i32
    return %arg0, %c0_i32, %c0_i32_0 : i32, i32, i32
  }
  func.func @transform_14(%arg0: i32, %arg1: i32) -> (i32, i32, i32) {
    %c0_i32 = arith.constant 0 : i32
    %c0_i32_0 = arith.constant 0 : i32
    %c0_i32_1 = arith.constant 0 : i32
    return %arg0, %c0_i32, %c0_i32_0 : i32, i32, i32
  }
  func.func @transform_15(%arg0: i32, %arg1: i32) -> (i32, i32, i32, i32) {
    %c0_i32 = arith.constant 0 : i32
    %c0_i32_0 = arith.constant 0 : i32
    %c0_i32_1 = arith.constant 0 : i32
    return %arg0, %arg1, %c0_i32, %c0_i32_0 : i32, i32, i32, i32
  }
  func.func @transform_16(%arg0: i32, %arg1: i32) -> (i32, i32, i32, i32) {
    %c0_i32 = arith.constant 0 : i32
    %c0_i32_0 = arith.constant 0 : i32
    %c0_i32_1 = arith.constant 0 : i32
    return %arg0, %arg1, %c0_i32, %c0_i32_0 : i32, i32, i32, i32
  }
}

module attributes {stable_mosaic.version = 11 : i64} {
  func.func @_final_head_kernel(%arg0: memref<16x32xf32, #tpu.memory_space<vmem>>, %arg1: memref<16x32xf32, #tpu.memory_space<vmem>>, %arg2: memref<1x32xf32, #tpu.memory_space<vmem>>, %arg3: memref<32x128xf32, #tpu.memory_space<vmem>>, %arg4: memref<16x32xf32, #tpu.memory_space<vmem>>, %arg5: memref<16x128xf32, #tpu.memory_space<vmem>>) attributes {dimension_semantics = [], scalar_prefetch = 0 : i64, scratch_operands = 0 : i64, tpu.core_type = #tpu.core_type<tc>} {
    %c0 = arith.constant 0 : index
    %c0_0 = arith.constant 0 : index
    %0 = vector.load %arg0[%c0, %c0_0] : memref<16x32xf32, #tpu.memory_space<vmem>>, vector<16x32xf32>
    %c0_1 = arith.constant 0 : index
    %c0_2 = arith.constant 0 : index
    %1 = vector.load %arg1[%c0_1, %c0_2] : memref<16x32xf32, #tpu.memory_space<vmem>>, vector<16x32xf32>
    %2 = arith.addf %0, %1 : vector<16x32xf32>
    %3 = arith.mulf %2, %2 : vector<16x32xf32>
    %cst = arith.constant dense<0.000000e+00> : vector<16xf32>
    %4 = vector.multi_reduction <add>, %3, %cst [1] : vector<16x32xf32> to vector<16xf32>
    %5 = vector.shape_cast %4 : vector<16xf32> to vector<16x1xf32>
    %cst_3 = arith.constant 3.200000e+01 : f32
    %6 = vector.broadcast %cst_3 : f32 to vector<16x1xf32>
    %7 = arith.divf %5, %6 : vector<16x1xf32>
    %cst_4 = arith.constant 9.99999974E-6 : f32
    %8 = vector.broadcast %cst_4 : f32 to vector<16x1xf32>
    %9 = arith.addf %7, %8 : vector<16x1xf32>
    %10 = math.rsqrt %9 : vector<16x1xf32>
    %11 = vector.broadcast %10 : vector<16x1xf32> to vector<16x32xf32>
    %12 = arith.mulf %2, %11 : vector<16x32xf32>
    %c0_5 = arith.constant 0 : index
    %c0_6 = arith.constant 0 : index
    %13 = vector.load %arg2[%c0_5, %c0_6] : memref<1x32xf32, #tpu.memory_space<vmem>>, vector<1x32xf32>
    %14 = vector.broadcast %13 : vector<1x32xf32> to vector<16x32xf32>
    %15 = arith.mulf %12, %14 : vector<16x32xf32>
    %c0_7 = arith.constant 0 : index
    %c0_8 = arith.constant 0 : index
    %16 = vector.load %arg4[%c0_7, %c0_8] : memref<16x32xf32, #tpu.memory_space<vmem>>, vector<16x32xf32>
    tpu.vector_store %arg4[%c0_7, %c0_8], %15 {strides = array<i32>} : memref<16x32xf32, #tpu.memory_space<vmem>>, vector<16x32xf32>,
    %c0_9 = arith.constant 0 : index
    %c0_10 = arith.constant 0 : index
    %17 = vector.load %arg3[%c0_9, %c0_10] : memref<32x128xf32, #tpu.memory_space<vmem>>, vector<32x128xf32>
    %cst_11 = arith.constant dense<0.000000e+00> : vector<16x128xf32>
    %18 = tpu.matmul %15, %17, %cst_11 {dimension_numbers = #tpu.dot_dimension_numbers<[1], [0], [0], [1], [0, 0, 1, 1], [], []>} : vector<16x32xf32>, vector<32x128xf32>, vector<16x128xf32> -> vector<16x128xf32>
    %c0_12 = arith.constant 0 : index
    %c0_13 = arith.constant 0 : index
    %19 = vector.load %arg5[%c0_12, %c0_13] : memref<16x128xf32, #tpu.memory_space<vmem>>, vector<16x128xf32>
    tpu.vector_store %arg5[%c0_12, %c0_13], %18 {strides = array<i32>} : memref<16x128xf32, #tpu.memory_space<vmem>>, vector<16x128xf32>,
    return
  }
}

module attributes {stable_mosaic.version = 11 : i64} {
  func.func @_classifier_kernel(%arg0: memref<2x32xf32, #tpu.memory_space<vmem>>, %arg1: memref<1x32xf32, #tpu.memory_space<vmem>>, %arg2: memref<1x32xf32, #tpu.memory_space<vmem>>, %arg3: memref<32x512xf32, #tpu.memory_space<vmem>>, %arg4: memref<1x512xf32, #tpu.memory_space<vmem>>, %arg5: memref<512x1xf32, #tpu.memory_space<vmem>>, %arg6: memref<1x1xf32, #tpu.memory_space<vmem>>, %arg7: memref<2x1xf32, #tpu.memory_space<vmem>>) attributes {dimension_semantics = [], scalar_prefetch = 0 : i64, scratch_operands = 0 : i64, tpu.core_type = #tpu.core_type<tc>} {
    %c0 = arith.constant 0 : index
    %c0_0 = arith.constant 0 : index
    %0 = vector.load %arg0[%c0, %c0_0] : memref<2x32xf32, #tpu.memory_space<vmem>>, vector<2x32xf32>
    %c0_1 = arith.constant 0 : index
    %c0_2 = arith.constant 0 : index
    %1 = vector.load %arg1[%c0_1, %c0_2] : memref<1x32xf32, #tpu.memory_space<vmem>>, vector<1x32xf32>
    %2 = vector.broadcast %1 : vector<1x32xf32> to vector<2x32xf32>
    %3 = arith.mulf %0, %2 : vector<2x32xf32>
    %c0_3 = arith.constant 0 : index
    %c0_4 = arith.constant 0 : index
    %4 = vector.load %arg2[%c0_3, %c0_4] : memref<1x32xf32, #tpu.memory_space<vmem>>, vector<1x32xf32>
    %5 = vector.broadcast %4 : vector<1x32xf32> to vector<2x32xf32>
    %6 = arith.addf %3, %5 : vector<2x32xf32>
    %c0_5 = arith.constant 0 : index
    %c0_6 = arith.constant 0 : index
    %7 = vector.load %arg3[%c0_5, %c0_6] : memref<32x512xf32, #tpu.memory_space<vmem>>, vector<32x512xf32>
    %cst = arith.constant dense<0.000000e+00> : vector<2x512xf32>
    %8 = tpu.matmul %6, %7, %cst {dimension_numbers = #tpu.dot_dimension_numbers<[1], [0], [0], [1], [0, 0, 1, 1], [], []>} : vector<2x32xf32>, vector<32x512xf32>, vector<2x512xf32> -> vector<2x512xf32>
    %c0_7 = arith.constant 0 : index
    %c0_8 = arith.constant 0 : index
    %9 = vector.load %arg4[%c0_7, %c0_8] : memref<1x512xf32, #tpu.memory_space<vmem>>, vector<1x512xf32>
    %10 = vector.broadcast %9 : vector<1x512xf32> to vector<2x512xf32>
    %11 = arith.addf %8, %10 : vector<2x512xf32>
    %cst_9 = arith.constant 0.000000e+00 : f32
    %12 = vector.broadcast %cst_9 : f32 to vector<2x512xf32>
    %13 = arith.cmpf ogt, %11, %12 : vector<2x512xf32>
    %cst_10 = arith.constant 0.000000e+00 : f32
    %14 = vector.broadcast %cst_10 : f32 to vector<2x512xf32>
    %15 = arith.minimumf %11, %14 : vector<2x512xf32>
    %16 = math.exp %15 : vector<2x512xf32>
    %cst_11 = arith.constant 1.000000e+00 : f32
    %17 = vector.broadcast %cst_11 : f32 to vector<2x512xf32>
    %18 = arith.subf %16, %17 : vector<2x512xf32>
    %cst_12 = arith.constant 1.67326319 : f32
    %19 = vector.broadcast %cst_12 : f32 to vector<2x512xf32>
    %20 = arith.mulf %19, %18 : vector<2x512xf32>
    %21 = arith.select %13, %11, %20 : vector<2x512xi1>, vector<2x512xf32>
    %cst_13 = arith.constant 1.05070102 : f32
    %22 = vector.broadcast %cst_13 : f32 to vector<2x512xf32>
    %23 = arith.mulf %22, %21 : vector<2x512xf32>
    %c0_14 = arith.constant 0 : index
    %c0_15 = arith.constant 0 : index
    %24 = vector.load %arg5[%c0_14, %c0_15] : memref<512x1xf32, #tpu.memory_space<vmem>>, vector<512x1xf32>
    %cst_16 = arith.constant dense<0.000000e+00> : vector<2x1xf32>
    %25 = tpu.matmul %23, %24, %cst_16 {dimension_numbers = #tpu.dot_dimension_numbers<[1], [0], [0], [1], [0, 0, 1, 1], [], []>} : vector<2x512xf32>, vector<512x1xf32>, vector<2x1xf32> -> vector<2x1xf32>
    %c0_17 = arith.constant 0 : index
    %c0_18 = arith.constant 0 : index
    %26 = vector.load %arg6[%c0_17, %c0_18] : memref<1x1xf32, #tpu.memory_space<vmem>>, vector<1x1xf32>
    %27 = vector.broadcast %26 : vector<1x1xf32> to vector<2x1xf32>
    %28 = arith.addf %25, %27 : vector<2x1xf32>
    %c0_19 = arith.constant 0 : index
    %c0_20 = arith.constant 0 : index
    %29 = vector.load %arg7[%c0_19, %c0_20] : memref<2x1xf32, #tpu.memory_space<vmem>>, vector<2x1xf32>
    tpu.vector_store %arg7[%c0_19, %c0_20], %28 {strides = array<i32>} : memref<2x1xf32, #tpu.memory_space<vmem>>, vector<2x1xf32>,
    return
  }
}

</mosaic_0001>

<bundles_post_ra>
// kernel: mamba_lm_head_forward.5
= control target key start
LH: loop header
LB: loop body
LE: loop exit
PB: predicated region body
PF: predicated region fallthrough
CT: control target
= control target key end

     0   :  { %vm16_vm0 = vcmask 261120   ;;  %s118_s0 = inlined_call_operand.vmem [shape: f32[16,32], index: 0, kind: input, shape index: {}]   ;;  %s119_s1 = inlined_call_operand.vmem [shape: f32[1,32], index: 1, kind: input, shape index: {}]   ;;  %s120_s2 = inlined_call_operand.vmem [shape: f32[1,32], index: 2, kind: input, shape index: {}]   ;;  %s121_s3 = inlined_call_operand.vmem [shape: f32[16,32], index: 3, kind: output, shape index: {}]  }
   0x1   :  { %v14_v0 = vld [vmem:[%s118_s0] sm:$0xff]  ;;  %v15_v1 = vld [vmem:[%s118_s0 + $0x8] sm:$0xff] }
   0x2   :  { %v17_v2 = vsel %vm16_vm0, %v14_v0, 0.0  ;;  %v20_v3 = vsel %vm16_vm0, %v15_v1, 0.0  ;;  %v68_v21 = vld [vmem:[%s119_s1] ss:$0 sm:$0xff] }
   0x3   :  { %18 = vadd.xlane.f32.xlu0 %v17_v2  ;;  %v69_v23 = vld [vmem:[%s120_s2] ss:$0 sm:$0xff] }
   0x7   :  { %21 = vadd.xlane.f32.xlu0 %v20_v3 }
  0x90   :  { %v19_v4 = vpop.xlane.xlu0 %18 }
  0x91   :  { %v24_v5 = vmul.f32 0.03125, %v19_v4 }
  0x93   :  { %v26_v6 = vsub.f32 %v14_v0, %v24_v5 }
  0x94   :  { %v22_v7 = vpop.xlane.xlu0 %21 }
  0x95   :  { %v25_v8 = vmul.f32 0.03125, %v22_v7  ;;  %v28_v9 = vmul.f32 %v26_v6, %v26_v6 }
  0x97   :  { %v27_v10 = vsub.f32 %v15_v1, %v25_v8  ;;  %v30_v11 = vsel %vm16_vm0, %v28_v9, 0.0 }
  0x98   :  { %31 = vadd.xlane.f32.xlu1 %v30_v11 }
  0x99   :  { %v29_v12 = vmul.f32 %v27_v10, %v27_v10 }
  0x9b   :  { %v33_v13 = vsel %vm16_vm0, %v29_v12, 0.0 }
  0x9c   :  { %34 = vadd.xlane.f32.xlu1 %v33_v13 }
 0x125   :  { %v32_v14 = vpop.xlane.xlu1 %31 }
 0x126   :  { %v36_v15 = vmul.f32 0.03125, %v32_v14 }
 0x128   :  { %v38_v16 = vadd.f32 1e-05, %v36_v15 }
 0x129   :  { %v35_v17 = vpop.xlane.xlu1 %34 }
 0x12a   :  { %70 = vrsqrt.f32 %v38_v16  ;;  %v37_v18 = vmul.f32 0.03125, %v35_v17 }
 0x12c   :  { %v39_v19 = vadd.f32 1e-05, %v37_v18 }
 0x12e   :  { %72 = vrsqrt.f32 %v39_v19 }
 0x134   :  { %v71_v20 = vpop.eup %70 }
 0x135   :  { %v42_v22 = vmul.f32 %v71_v20, %v26_v6 }
 0x137   :  { %v51_v24 = vmul.f32 %v68_v21, %v42_v22 }
 0x138   :  { %v73_v25 = vpop.eup %72 }
 0x139   :  { %v60_v26 = vadd.f32 %v69_v23, %v51_v24  ;;  %v43_v27 = vmul.f32 %v73_v25, %v27_v10 }
 0x13b   :  { %62 = vst.msk [vmem:[%s121_s3] sm:$0xff] %vm16_vm0, %v60_v26  ;;  %v52_v28 = vmul.f32 %v68_v21, %v43_v27 }
 0x13d   :  { %v61_v29 = vadd.f32 %v69_v23, %v52_v28 }
 0x13f   :  { %63 = vst.msk [vmem:[%s121_s3 + $0x8] sm:$0xff] %vm16_vm0, %v61_v29 }

// kernel: mamba_lm_head_forward.8
= control target key start
LH: loop header
LB: loop body
LE: loop exit
PB: predicated region body
PF: predicated region fallthrough
CT: control target
= control target key end

     0   :  { %s305_s0 = inlined_call_operand.vmem [shape: f32[16,32], index: 0, kind: input, shape index: {}]   ;;  %s306_s1 = inlined_call_operand.vmem [shape: f32[16,32], index: 1, kind: input, shape index: {}]   ;;  %s307_s2 = inlined_call_operand.vmem [shape: f32[1,32], index: 2, kind: input, shape index: {}]   ;;  %s308_s3 = inlined_call_operand.vmem [shape: f32[32,128], index: 3, kind: input, shape index: {}]   ;;  %s309_s4 = inlined_call_operand.vmem [shape: f32[16,32], index: 4, kind: output, shape index: {0}]   ;;  %s310_s5 = inlined_call_operand.hbm [shape: f32[16,128], index: 5, kind: output, shape index: {1}]  }
   0x1   :  { %v20_v0 = vld [vmem:[%s305_s0] sm:$0xff]  ;;  %v21_v2 = vld [vmem:[%s305_s0 + $0x8] sm:$0xff] }
   0x2   :  { %v22_v1 = vld [vmem:[%s306_s1] sm:$0xff]  ;;  %v23_v4 = vld [vmem:[%s306_s1 + $0x8] sm:$0xff] }
   0x3   :  { %v24_v3 = vadd.f32 %v22_v1, %v20_v0 }
   0x4   :  { %11 = vsyncpa [#allocation3], 0  ;;  %vm28_vm0 = vcmask 261120   ;;  %v25_v5 = vadd.f32 %v23_v4, %v21_v2  ;;  %v55_v10 = vld [vmem:[%s308_s3] sm:$0xff]  ;;  %v56_v11 = vld [vmem:[%s308_s3 + $0x8] sm:$0xff] }
   0x5   :  { %v26_v6 = vmul.f32 %v24_v3, %v24_v3  ;;  %v57_v12 = vld [vmem:[%s308_s3 + $0x10] sm:$0xff]  ;;  %v182_v13 = vpack.c.bf16 %v56_v11, %v55_v10  ;;  %v58_v14 = vld [vmem:[%s308_s3 + $0x18] sm:$0xff]  ;;  %v162_v23 = vld [vmem:[%s307_s2] ss:$0 sm:$0xff]  ;;  %s221_s2 = smov [#allocation2]  }
   0x6   :  { %v27_v7 = vmul.f32 %v25_v5, %v25_v5  ;;  %v186_v15 = vpack.c.bf16 %v58_v14, %v57_v12  ;;  %s149_s12 = sshll.u32 %s221_s2, 4  ;;  %s150_s12 = int_to_ptr.vmem [resolvable:$true] %s149_s12 }
   0x7   :  { %v29_v8 = vsel %vm28_vm0, %v26_v6, 0.0  ;;  %183 = vmatprep.subr.bf16.mxu0 %v182_v13  ;;  %s197_s13 = scalar_lea.vmem %s150_s12, 256  ;;  %p202_p1 = scmp.lt.s32.totalorder %s150_s12, %s150_s12 }
   0x8   :  { %30 = vadd.xlane.f32.xlu0 %v29_v8  ;;  %v32_v9 = vsel %vm28_vm0, %v27_v7, 0.0  ;;  %185 = vmatpush3.bf16.msra.mxu0 %v182_v13  ;;  %p198_p0 = scmp.ne.s32.totalorder %s150_s12, %s197_s13  ;;  %p203_p2 = scmp.lt.s32.totalorder %s197_s13, %s197_s13 }
   0x9   :  { %187 = vmatprep.subr.bf16.mxu0 %v186_v15 }
   0xa   :  { %p204_p3 = por %p203_p2, %p202_p1 }
   0xc   :  { %33 = vadd.xlane.f32.xlu0 %v32_v9  ;;  %189 = vmatpush3.bf16.msra.mxu0 %v186_v15  ;;  %p205_p4 = pnand %p204_p3, %p198_p0 }
  0x95   :  { %v31_v16 = vpop.xlane.xlu0 %30 }
  0x96   :  { %v36_v17 = vmul.f32 0.03125, %v31_v16 }
  0x98   :  { %v38_v18 = vadd.f32 1e-05, %v36_v17 }
  0x99   :  { %v34_v19 = vpop.xlane.xlu0 %33 }
  0x9a   :  { %193 = vrsqrt.f32 %v38_v18  ;;  %v37_v20 = vmul.f32 0.03125, %v34_v19 }
  0x9c   :  { %v39_v21 = vadd.f32 1e-05, %v37_v20 }
  0x9e   :  { %195 = vrsqrt.f32 %v39_v21 }
  0xa4   :  { %v194_v22 = vpop.eup %193 }
  0xa5   :  { %v42_v24 = vmul.f32 %v194_v22, %v24_v3 }
  0xa7   :  { %v51_v25 = vmul.f32 %v162_v23, %v42_v24 }
  0xa8   :  { %v196_v26 = vpop.eup %195 }
  0xa9   :  { %v43_v27 = vmul.f32 %v196_v26, %v25_v5  ;;  %53 = vst.msk [vmem:[%s309_s4] sm:$0xff] %vm28_vm0, %v51_v25  ;;  %179 = vmatprep.mubr.msk.f32.mxu0 %vm28_vm0, %v51_v25 }
  0xab   :  { %v52_v28 = vmul.f32 %v162_v23, %v43_v27 }
  0xad   :  { %54 = vst.msk [vmem:[%s309_s4 + $0x8] sm:$0xff] %vm28_vm0, %v52_v28  ;;  %180 = vmatmul.mubr.msk.f32.vlgmr.msra.gmra.mrb[0].mxu0 %vm28_vm0, %v52_v28 }
 0x180   :  { %v181_v29 = vpop.f32.mrb[0].mxu0 }
 0x181   :  { %141 = vst [vmem:[#allocation2 + $0x8] sm:$0xff] %v181_v29  ;;  %v131_v30 = vpop.f32.mrb[1].mxu0 }
 0x182   :  { %140 = vst [vmem:[#allocation2] sm:$0xff] %v131_v30 }
 0x183   :  { %208 = shalt.err (!%p205_p4)
}
 0x184   :  { %s209_s4 = scalar_lea.hbm %s310_s5, 256 }
 0x185   :  { %p210_p5 = scmp.ne.s32.totalorder %s310_s5, %s209_s4  ;;  %p213_p6 = scmp.lt.u32.totalorder %s209_s4, %s310_s5 }
 0x187   :  { %p215_p7 = pnand %p213_p6, %p210_p5 }
 0x189   :  { %218 = shalt.err (!%p215_p7)
}
 0x18a   :  { %s222_s20 = smov 128   ;;  %s223_s21 = smov 8  }
 0x18b   :  { %155 = dma.vmem_to_hbm [thread:$0]  %s150_s12, 256, %s310_s5, [#allocation3], %s222_s20, %s222_s20, %s223_s21  }
 0x18c   :  { %219 = dma.done.wait [#allocation3], 256  }
 0x18d   :  { %220 = vsyncadd [#allocation3], 4294967040 }
 0x18e   :  { %161 = vsyncpa [#allocation3], 1 }

// kernel: mamba_lm_head_forward.6
= control target key start
LH: loop header
LB: loop body
LE: loop exit
PB: predicated region body
PF: predicated region fallthrough
CT: control target
= control target key end

     0   :  { %s3257_s21 = smov 0   ;;  %s3259_s22 = smov 0   ;;  %s3585_s0 = inlined_call_operand.vmem [shape: f32[2,2,8,32], index: 0, kind: input, shape index: {}]   ;;  %s3586_s1 = inlined_call_operand.vmem [shape: f32[2,2,8,32], index: 1, kind: input, shape index: {}]   ;;  %s3587_s2 = inlined_call_operand.vmem [shape: f32[2,1,32], index: 2, kind: input, shape index: {}]   ;;  %s3588_s3 = inlined_call_operand.vmem [shape: f32[2,32,64], index: 3, kind: input, shape index: {}]   ;;  %s3589_s4 = inlined_call_operand.vmem [shape: f32[2,32,64], index: 4, kind: input, shape index: {}]   ;;  %s3590_s5 = inlined_call_operand.vmem [shape: f32[2,4,64], index: 5, kind: input, shape index: {}]   ;;  %s3591_s6 = inlined_call_operand.vmem [shape: f32[2,1,64], index: 6, kind: input, shape index: {}]   ;;  %s3592_s7 = inlined_call_operand.vmem [shape: f32[2,64,64], index: 7, kind: input, shape index: {}]   ;;  %s3593_s8 = inlined_call_operand.vmem [shape: f32[2,1,64], index: 8, kind: input, shape index: {}]   ;;  %s3594_s9 = inlined_call_operand.vmem [shape: f32[2,16,64], index: 9, kind: input, shape index: {}]   ;;  %s3595_s10 = inlined_call_operand.vmem [shape: f32[2,16,64], index: 10, kind: input, shape index: {}]   ;;  %s3596_s11 = inlined_call_operand.vmem [shape: f32[2,16,64], index: 11, kind: input, shape index: {}]   ;;  %s3597_s12 = inlined_call_operand.vmem [shape: f32[2,1,64], index: 12, kind: input, shape index: {}]   ;;  %s3598_s13 = inlined_call_operand.vmem [shape: f32[2,64,32], index: 13, kind: input, shape index: {}]   ;;  %s3599_s14 = inlined_call_operand.vmem [shape: f32[2,1,32], index: 14, kind: input, shape index: {}]   ;;  %s3600_s15 = inlined_call_operand.vmem [shape: f32[2,2,8,32], index: 15, kind: output, shape index: {0}]   ;;  %s3601_s16 = inlined_call_operand.vmem [shape: f32[2,2,8,32], index: 16, kind: output, shape index: {1}]  }
   0x1   :  { %3605 = sst [smem:[#allocation8_spill]] %s3585_s0  ;;  %s3261_s23 = smov 0  }
   0x2   :  { %s3263_s24 = smov 0   ;;  %s3265_s25 = smov 0  }
   0x3 LB: > { %3606 = sst [smem:[#allocation3_spill]] %s3159_s23  ;;  %s36_s26 = sadd.s32 1, %s3159_s23  ;;  %s3167_s25 = sphi %s3265_s25, %s27_s25   ;;  %s3163_s24 = sphi %s3263_s24, %s3616_s24   ;;  %s3159_s23 = sphi %s3261_s23, %s3615_s23   ;;  %s3155_s22 = sphi %s3259_s22, %s3614_s22   ;;  %s3151_s21 = sphi %s3257_s21, %s3613_s21  }
   0x4   : > { %3607 = sst [smem:[#allocation4_spill]] %s3163_s24  ;;  %s39_s27 = sadd.s32 1, %s3163_s24 }
   0x5   : > { %3608 = sst [smem:[#allocation5_spill]] %s3167_s25  ;;  %p37_p0 = scmp.ge.s32.totalorder %s36_s26, 2 }
   0x6   : > { %p2715_p1 = scmp.ge.s32.totalorder %s3167_s25, 1  ;;  %p620_p2 = scmp.lt.s32.totalorder %s3167_s25, 5 }
   0x7   : > { %s3618_s26 = smov (%p37_p0, %s36_s26), 0  ;;  %s3620_s27 = smov (!%p37_p0, %s39_s27), %s3163_s24 }
   0x8   : > { %3609 = sst [smem:[#allocation6_spill]] %s3618_s26  ;;  %p621_p3 = pnand %p2715_p1, %p620_p2 }
   0x9   : > { %p41_p4 = scmp.ge.s32.totalorder %s3620_s27, 2  ;;  %p746_p5 = scmp.lt.s32.totalorder (!%p621_p3), %s3155_s22, 1  ;;  %vm835_vm0 = vcmask (!%p621_p3), 261120   ;;  %v3169_v5 = vmov (!%p621_p3), 0.0|0.0   ;;  %vm3170_vm1 = vmmov (!%p621_p3), 0   ;;  %v3171_v6 = vmov (!%p621_p3), 0.0  }
   0xa   : > { %624 = sbr.rel (%p621_p3) target bundleno = 1399 (0x577), region = 80  ;;  %p748_p6 = scmp.lt.s32.totalorder (!%p621_p3), %s3151_s21, 1  ;;  %2976 = vmatprep.subr.bf16.mxu0 (!%p621_p3), %v3169_v5  ;;  %2846 = vmatprep.mubr.msk.f32.mxu0 (!%p621_p3), %vm3170_vm1, %v3171_v6  ;;  %v1006_v26 = vlaneseq (!%p621_p3)  ;;  %vm1022_vm4 = vcmask (!%p621_p3), 64512   ;;  %vm1296_vm6 = vcmask (!%p621_p3), 523264   ;;  %vm1494_vm8 = vcmask (!%p621_p3), 130048  }
   0xb   : > { %s3622_s27 = smov (%p41_p4, %s3620_s27), 0  ;;  %s3611_s18 = sld [smem:[#allocation8_spill]] (!%p621_p3)  ;;  %2860 = vmatprep.subr.mxu1 (!%p621_p3), %v3171_v6  ;;  %2862 = vmatprep.mubr.msk.f32.mxu1 (!%p621_p3), %vm3170_vm1, %v3171_v6  ;;  %vm3002_vm7 = vmpackc.low (!%p621_p3), %vm1296_vm6, %vm1296_vm6  ;;  %vm1568_vm9 = vcmask (!%p621_p3), 516096  }
   0xc   : > { %3610 = sst [smem:[#allocation7_spill]] %s3622_s27  ;;  %v3333_v27 = vshrl.u32 (!%p621_p3), %v1006_v26, 7  ;;  %v1009_v28 = vand.u32 (!%p621_p3), 127, %v1006_v26 }
   0xe   : > { %v2743_v29 = vadd.s32 (!%p621_p3), 4294967293, %v3333_v27  ;;  %v2749_v30 = vadd.s32 (!%p621_p3), 4294967295, %v3333_v27  ;;  %v2746_v31 = vadd.s32 (!%p621_p3), 4294967294, %v3333_v27  ;;  %v3385_v54 = vsub.s32 (!%p621_p3), 0, %v3333_v27 }
   0xf   : > { %v3389_v57 = vsub.s32 (!%p621_p3), 1, %v3333_v27  ;;  %v3392_v58 = vsub.s32 (!%p621_p3), 2, %v3333_v27  ;;  %v3399_v60 = vsub.s32 (!%p621_p3), 3, %v3333_v27 }
  0x10   : > { %vm1019_vm2 = vcmp.eq.s32.totalorder (!%p621_p3), %v1009_v28, %v2743_v29  ;;  %vm1186_vm3 = vcmp.eq.s32.totalorder (!%p621_p3), %v1009_v28, %v2749_v30  ;;  %vm1103_vm5 = vcmp.eq.s32.totalorder (!%p621_p3), %v1009_v28, %v2746_v31 }
  0x11   : > { %s3624_s22 = smov (!%p746_p5, %s3155_s22), 1  ;;  %s3626_s21 = smov (!%p748_p6, %s3151_s21), 1  ;;  %v2744_v32 = vsel %vm1019_vm2, 1.0, %v3171_v6  ;;  %v2750_v35 = vsel %vm1186_vm3, 1.0, %v3171_v6  ;;  %v2747_v36 = vsel %vm1103_vm5, 1.0, %v3171_v6 }
  0x12   : > { %s2716_s28 = sshll.u32 %s3624_s22, 1  ;;  %s764_s17 = scalar_lea.vmem %s3587_s2, %s3624_s22 }
  0x13   : > { %s751_s29 = sadd.s32 %s2716_s28, %s3626_s21  ;;  %s2770_s21 = sshll.u32 %s3624_s22, 5  ;;  %v2739_v19 = vld [vmem:[%s764_s17] ss:$0 sm:$0xff] }
  0x14   : > { %s3290_s30 = sshll.u32 %s751_s29, 3  ;;  %s769_s29 = scalar_lea.vmem %s3588_s3, %s2770_s21 }
  0x15   : > { %s753_s19 = scalar_lea.vmem %s3611_s18, %s3290_s30  ;;  %s761_s26 = scalar_lea.vmem %s3586_s1, %s3290_s30  ;;  %v854_v7 = vld [vmem:[%s769_s29] sm:$0xff]  ;;  %v855_v8 = vld [vmem:[%s769_s29 + $0x8] sm:$0xff]  ;;  %v856_v9 = vld [vmem:[%s769_s29 + $0x10] sm:$0xff] }
  0x16   : > { %s831_s25 = scalar_lea.vmem %s3601_s16, %s3290_s30  ;;  %v832_v0 = vld [vmem:[%s753_s19] sm:$0xff]  ;;  %v2977_v10 = vpack.c.bf16 %v855_v8, %v854_v7  ;;  %v857_v11 = vld [vmem:[%s769_s29 + $0x18] sm:$0xff]  ;;  %s2772_s18 = sshll.u32 %s3624_s22, 6 }
  0x17   : > { %v833_v1 = vld [vmem:[%s761_s26] sm:$0xff]  ;;  %v2980_v12 = vpack.c.bf16 %v857_v11, %v856_v9  ;;  %s3368_s27 = sshll.u32 %s3624_s22, 4  ;;  %s2724_s24 = sshll.u32 %s3624_s22, 2 }
  0x18   : > { %v834_v2 = vadd.f32 %v833_v1, %v832_v0  ;;  %2978 = vmatpush3.bf16.msra.mxu0 %v2977_v10  ;;  %s799_s23 = scalar_lea.vmem %s3595_s10, %s3368_s27  ;;  %s778_s0 = scalar_lea.vmem %s3590_s5, %s2724_s24 }
  0x19   : > { %2979 = vmatprep.subr.bf16.mxu0 %v3169_v5  ;;  %v1379_v47 = vld [vmem:[%s799_s23] sm:$0xff]  ;;  %v1380_v49 = vld [vmem:[%s799_s23 + $0x8] sm:$0xff]  ;;  %s781_s20 = scalar_lea.vmem %s3591_s6, %s3624_s22  ;;  %s794_s29 = scalar_lea.vmem %s3594_s9, %s3368_s27 }
  0x1a   : > { %v837_v3 = vmul.f32 %v834_v2, %v834_v2  ;;  %836 = vst.msk [vmem:[%s831_s25] sm:$0xff] %vm835_vm0, %v834_v2  ;;  %s774_s25 = scalar_lea.vmem %s3589_s4, %s2770_s21  ;;  %s786_s21 = scalar_lea.vmem %s3592_s7, %s2772_s18  ;;  %v3001_v50 = vpack.c.bf16 %v1380_v49, %v1379_v47  ;;  %v1005_v55 = vld [vmem:[%s778_s0] sm:$0xf] }
  0x1b   : > { %v931_v16 = vld [vmem:[%s774_s25] sm:$0xff]  ;;  %v932_v17 = vld [vmem:[%s774_s25 + $0x8] sm:$0xff]  ;;  %v933_v23 = vld [vmem:[%s774_s25 + $0x10] sm:$0xff]  ;;  %v1099_v56 = vrot.slane %v1005_v55, %v3385_v54  ;;  %v1182_v63 = vrot.slane %v1005_v55, %v3389_v57  ;;  %v1265_v0 = vrot.slane %v1005_v55, %v3392_v58  ;;  %v1271_v7 = vrot.slane %v1005_v55, %v3399_v60  ;;  %s804_s17 = scalar_lea.vmem %s3596_s11, %s3368_s27  ;;  %s807_s28 = scalar_lea.vmem %s3597_s12, %s3624_s22 }
  0x1c   : > { %v838_v4 = vsel %vm835_vm0, %v837_v3, 0.0  ;;  %2981 = vmatpush3.bf16.msra.mxu0 %v2980_v12  ;;  %v2983_v21 = vpack.c.bf16 %v932_v17, %v931_v16  ;;  %v934_v24 = vld [vmem:[%s774_s25 + $0x18] sm:$0xff]  ;;  %v1281_v39 = vld [vmem:[%s786_s21] sm:$0xff]  ;;  %v1282_v40 = vld [vmem:[%s786_s21 + $0x8] sm:$0xff]  ;;  %v3451_v55 = vsub.s32 7, %v3333_v27  ;;  %s789_s25 = scalar_lea.vmem %s3593_s8, %s3624_s22  ;;  %s815_s24 = scalar_lea.vmem %s3599_s14, %s3624_s22 }
  0x1d   : > { %839 = vadd.xlane.f32.xlu0 %v838_v4  ;;  %2982 = vmatprep.subr.bf16.mxu0 %v3169_v5  ;;  %v2986_v25 = vpack.c.bf16 %v934_v24, %v933_v23  ;;  %v2989_v41 = vpack.c.bf16 %v1282_v40, %v1281_v39  ;;  %v1283_v42 = vld [vmem:[%s786_s21 + $0x10] sm:$0xff]  ;;  %v1284_v43 = vld [vmem:[%s786_s21 + $0x18] sm:$0xff]  ;;  %v1285_v45 = vld [vmem:[%s786_s21 + $0x20] sm:$0xff]  ;;  %s823_s0 = scalar_lea.vmem %s3600_s15, %s3290_s30 }
  0x1e   : > { %v2992_v44 = vpack.c.bf16 %v1284_v43, %v1283_v42  ;;  %v1286_v46 = vld [vmem:[%s786_s21 + $0x28] sm:$0xff]  ;;  %v1287_v51 = vld [vmem:[%s786_s21 + $0x30] sm:$0xff]  ;;  %v1288_v52 = vld [vmem:[%s786_s21 + $0x38] sm:$0xff]  ;;  %v3437_v42 = vsub.s32 5, %v3333_v27 }
  0x1f   : > { %v2995_v48 = vpack.c.bf16 %v1286_v46, %v1285_v45  ;;  %v2998_v53 = vpack.c.bf16 %v1288_v52, %v1287_v51  ;;  %v2742_v1 = vld [vmem:[%s781_s20] ss:$0 sm:$0xff]  ;;  %s812_s20 = scalar_lea.vmem %s3598_s13, %s2772_s18 }
  0x20   : > { %v1459_v23 = vld [vmem:[%s794_s29] sm:$0xff] }
  0xaa   : > { %v840_v13 = vpop.xlane.xlu0 %839 }
  0xab   : > { %v842_v14 = vmul.f32 0.03125, %v840_v13 }
  0xad   : > { %v843_v15 = vadd.f32 1e-05, %v842_v14 }
  0xaf   : > { %3083 = vrsqrt.f32 %v843_v15 }
  0xb9   : > { %v3084_v18 = vpop.eup %3083 }
  0xba   : > { %v845_v20 = vmul.f32 %v3084_v18, %v834_v2 }
  0xbc   : > { %v853_v22 = vmul.f32 %v2739_v19, %v845_v20 }
  0xbe   : > { %2847 = vmatmul.mubr.msk.f32.vlgmr.msra.gmra.mrb[0].mxu0 %vm835_vm0, %v853_v22 }
  0xbf   : > { %2984 = vmatpush3.bf16.msra.mxu0 %v2983_v21  ;;  %2857 = vmatprep.mubr.msk.f32.mxu0 %vm3170_vm1, %v3171_v6 }
  0xc0   : > { %2985 = vmatprep.subr.bf16.mxu0 %v3169_v5 }
  0xc3   : > { %2987 = vmatpush3.bf16.msra.mxu0 %v2986_v25 }
  0xc4   : > { %2870 = vmatprep.subr.mxu0 %v3171_v6 }
  0xc6   : > { %2858 = vmatmul.mubr.msk.f32.vlgmr.msra.gmra.mrb[2].mxu0 %vm835_vm0, %v853_v22  ;;  %v1460_v22 = vld [vmem:[%s794_s29 + $0x8] sm:$0xff] }
  0xc7   : > { %2872 = vmatprep.mubr.msk.f32.mxu0 %vm3170_vm1, %v3171_v6 }
 0x191   : > { %v3339_v33 = vpop.f32.mrb[0].mxu0 }
 0x192   : > { %v2848_v34 = vpop.f32.mrb[1].mxu0  ;;  %2861 = vmatpush3.msra.mxu1 %v3339_v33  ;;  %2871 = vmatpush3.msra.mxu0 %v3339_v33  ;;  %v1272_v13 = vmul.f32 %v1271_v7, %v3339_v33 }
 0x193   : > { %2863 = vmatmul.mubr.msk.f32.vlgmr.msra.gmra.mrb[0].mxu1 %vm1022_vm4, %v2744_v32  ;;  %2865 = vmatprep.subr.mxu1 %v3171_v6 }
 0x194   : > { %2866 = vmatpush3.msra.mxu1 %v3339_v33  ;;  %2867 = vmatprep.mubr.msk.f32.mxu1 %vm3170_vm1, %v3171_v6 }
 0x195   : > { %2873 = vmatmul.mubr.msk.f32.vlgmr.msra.gmra.mrb[4].mxu0 %vm1022_vm4, %v2750_v35  ;;  %2988 = vmatprep.subr.bf16.mxu1 %v3169_v5  ;;  %v3430_v35 = vsub.s32 4, %v3333_v27 }
 0x196   : > { %3000 = vmatprep.subr.bf16.mxu0 %v3169_v5  ;;  %2898 = vmatprep.mubr.msk.f32.mxu0 %vm3170_vm1, %v3171_v6 }
 0x197   : > { %2868 = vmatmul.mubr.msk.f32.vlgmr.msra.gmra.mrb[2].mxu1 %vm1022_vm4, %v2747_v36 }
 0x198   : > { %2891 = vmatprep.mubr.msk.f32.mxu1 %vm3170_vm1, %v3171_v6  ;;  %2990 = vmatpush3.bf16.msra.mxu1 %v2989_v41 }
 0x199   : > { %v3358_v37 = vpop.f32.mrb[2].mxu0  ;;  %2991 = vmatprep.subr.bf16.mxu1 %v3169_v5  ;;  %3003 = vmatpush3.bf16.xpose.msk.msra.mxu0 %vm3002_vm7, %v3001_v50 }
 0x19a   : > { %v2859_v38 = vpop.f32.mrb[3].mxu0  ;;  %3004 = vmatprep.subr.bf16.mxu0 %v3169_v5 }
 0x19c   : > { %2993 = vmatpush3.bf16.msra.mxu1 %v2992_v44 }
 0x19d   : > { %2994 = vmatprep.subr.bf16.mxu1 %v3169_v5 }
 0x1a0   : > { %2996 = vmatpush3.bf16.msra.mxu1 %v2995_v48  ;;  %v3444_v48 = vsub.s32 6, %v3333_v27 }
 0x1a1   : > { %2997 = vmatprep.subr.bf16.mxu1 %v3169_v5 }
 0x1a4   : > { %2999 = vmatpush3.bf16.msra.mxu1 %v2998_v53 }
 0x1a5   : > { %3010 = vmatprep.subr.bf16.mxu1 %v3169_v5 }
 0x266   : > { %v1092_v59 = vpop.f32.mrb[0].mxu1 }
 0x267   : > { %v1100_v61 = vmul.f32 %v1099_v56, %v1092_v59  ;;  %v2864_v62 = vpop.f32.mrb[1].mxu1 }
 0x268   : > { %v1258_v2 = vpop.f32.mrb[4].mxu0 }
 0x269   : > { %v2874_v3 = vpop.f32.mrb[5].mxu0  ;;  %v1101_v8 = vadd.f32 %v2742_v1, %v1100_v61  ;;  %v1266_v11 = vmul.f32 %v1265_v0, %v1258_v2 }
 0x26a   : > { %v1175_v4 = vpop.f32.mrb[2].mxu1 }
 0x26b   : > { %v1183_v9 = vmul.f32 %v1182_v63, %v1175_v4  ;;  %v2869_v10 = vpop.f32.mrb[3].mxu1 }
 0x26d   : > { %v1184_v12 = vadd.f32 %v1183_v9, %v1101_v8 }
 0x26f   : > { %v1267_v14 = vadd.f32 %v1266_v11, %v1184_v12  ;;  %v2752_v11 = vld [vmem:[%s789_s25] ss:$0 sm:$0xff] }
 0x271   : > { %v1273_v15 = vadd.f32 %v1272_v13, %v1267_v14 }
 0x273   : > { %v1274_v16 = vsub.f32 0.0, %v1273_v15 }
 0x275   : > { %v1275_v17 = vmul.f32 1.442695, %v1274_v16 }
 0x277   : > { %3085 = vpow2.f32 %v1275_v17 }
 0x281   : > { %v3086_v18 = vpop.eup %3085 }
 0x282   : > { %v1277_v19 = vadd.f32 1.0, %v3086_v18 }
 0x284   : > { %3087 = vrcp.f32 %v1277_v19 }
 0x28e   : > { %v3088_v20 = vpop.eup %3087 }
 0x28f   : > { %v3409_v21 = vmul.f32 %v3088_v20, %v1273_v15 }
 0x291   : > { %2892 = vmatmul.mubr.msk.f32.vlgmr.msra.gmra.mrb[4].mxu1 %vm1296_vm6, %v3409_v21  ;;  %2899 = vmatmul.mubr.msk.f32.vlgmr.msra.gmra.mrb[6].mxu0 %vm1296_vm6, %v3409_v21  ;;  %v1465_v24 = vrot.slane %v3409_v21, %v3385_v54  ;;  %v1573_v25 = vrot.slane %v3409_v21, %v3389_v57  ;;  %v1679_v29 = vrot.slane %v3409_v21, %v3392_v58 }
 0x292   : > { %2905 = vmatprep.mubr.msk.f32.mxu0 %vm3170_vm1, %v3171_v6  ;;  %2919 = vmatprep.mubr.msk.f32.mxu1 %vm3170_vm1, %v3171_v6  ;;  %v1785_v34 = vrot.slane %v3409_v21, %v3399_v60  ;;  %v1891_v41 = vrot.slane %v3409_v21, %v3430_v35  ;;  %v1997_v47 = vrot.slane %v3409_v21, %v3437_v42 }
 0x293   : > { %v1467_v26 = vmul.f32 %v1465_v24, %v1460_v22  ;;  %v1466_v28 = vmul.f32 %v1465_v24, %v1459_v23  ;;  %v1574_v32 = vmul.f32 %v1573_v25, %v1459_v23  ;;  %v1575_v33 = vmul.f32 %v1573_v25, %v1460_v22 }
 0x294   : > { %v1680_v39 = vmul.f32 %v1679_v29, %v1459_v23  ;;  %v1681_v40 = vmul.f32 %v1679_v29, %v1460_v22  ;;  %v1786_v45 = vmul.f32 %v1785_v34, %v1459_v23  ;;  %v1787_v46 = vmul.f32 %v1785_v34, %v1460_v22  ;;  %v1458_v29 = vld [vmem:[%s804_s17 + $0x8] sm:$0xff] }
 0x295   : > { %v1471_v30 = vsel %vm1296_vm6, %v1467_v26, 0.0  ;;  %v1468_v31 = vsel %vm1296_vm6, %v1466_v28, 0.0  ;;  %v1576_v36 = vsel %vm1296_vm6, %v1574_v32, 0.0  ;;  %v1579_v38 = vsel %vm1296_vm6, %v1575_v33, 0.0  ;;  %v1457_v28 = vld [vmem:[%s804_s17] sm:$0xff] }
 0x296   : > { %1472 = vadd.xlane.f32.xlu1 %v1471_v30  ;;  %1469 = vadd.xlane.f32.xlu0 %v1468_v31  ;;  %v1682_v43 = vsel %vm1296_vm6, %v1680_v39, 0.0  ;;  %v1685_v44 = vsel %vm1296_vm6, %v1681_v40, 0.0  ;;  %v1788_v49 = vsel %vm1296_vm6, %v1786_v45, 0.0  ;;  %v1791_v50 = vsel %vm1296_vm6, %v1787_v46, 0.0 }
 0x297   : > { %v1892_v51 = vmul.f32 %v1891_v41, %v1459_v23  ;;  %v1893_v52 = vmul.f32 %v1891_v41, %v1460_v22  ;;  %v2103_v53 = vrot.slane %v3409_v21, %v3444_v48  ;;  %v1998_v61 = vmul.f32 %v1997_v47, %v1459_v23 }
 0x298   : > { %v1999_v62 = vmul.f32 %v1997_v47, %v1460_v22  ;;  %v2209_v3 = vrot.slane %v3409_v21, %v3451_v55 }
 0x299   : > { %v1894_v56 = vsel %vm1296_vm6, %v1892_v51, 0.0  ;;  %v1897_v59 = vsel %vm1296_vm6, %v1893_v52, 0.0  ;;  %v2104_v63 = vmul.f32 %v2103_v53, %v1459_v23  ;;  %v2000_v0 = vsel %vm1296_vm6, %v1998_v61, 0.0 }
 0x29a   : > { %1577 = vadd.xlane.f32.xlu1 %v1576_v36  ;;  %1580 = vadd.xlane.f32.xlu0 %v1579_v38  ;;  %v2003_v1 = vsel %vm1296_vm6, %v1999_v62, 0.0  ;;  %v2105_v2 = vmul.f32 %v2103_v53, %v1460_v22  ;;  %v2210_v7 = vmul.f32 %v2209_v3, %v1459_v23  ;;  %v2211_v8 = vmul.f32 %v2209_v3, %v1460_v22 }
 0x29b   : > { %v2106_v27 = vsel %vm1296_vm6, %v2104_v63, 0.0 }
 0x29c   : > { %v2109_v4 = vsel %vm1296_vm6, %v2105_v2, 0.0  ;;  %v2212_v9 = vsel %vm1296_vm6, %v2210_v7, 0.0  ;;  %v2215_v10 = vsel %vm1296_vm6, %v2211_v8, 0.0 }
 0x29e   : > { %1683 = vadd.xlane.f32.xlu1 %v1682_v43  ;;  %1686 = vadd.xlane.f32.xlu0 %v1685_v44 }
 0x2a2   : > { %1789 = vadd.xlane.f32.xlu1 %v1788_v49  ;;  %1792 = vadd.xlane.f32.xlu0 %v1791_v50 }
 0x2a6   : > { %1895 = vadd.xlane.f32.xlu1 %v1894_v56  ;;  %1898 = vadd.xlane.f32.xlu0 %v1897_v59 }
 0x2aa   : > { %2001 = vadd.xlane.f32.xlu1 %v2000_v0  ;;  %2004 = vadd.xlane.f32.xlu0 %v2003_v1 }
 0x2ae   : > { %2107 = vadd.xlane.f32.xlu1 %v2106_v27  ;;  %2110 = vadd.xlane.f32.xlu0 %v2109_v4 }
 0x2b2   : > { %2213 = vadd.xlane.f32.xlu1 %v2212_v9  ;;  %2216 = vadd.xlane.f32.xlu0 %v2215_v10 }
 0x323   : > { %v1473_v33 = vpop.xlane.xlu1 %1472  ;;  %v1470_v39 = vpop.xlane.xlu0 %1469 }
 0x327   : > { %v1578_v56 = vpop.xlane.xlu1 %1577  ;;  %v1581_v62 = vpop.xlane.xlu0 %1580 }
 0x32b   : > { %v1684_v8 = vpop.xlane.xlu1 %1683  ;;  %v1687_v10 = vpop.xlane.xlu0 %1686 }
 0x364   : > { %v1366_v12 = vpop.f32.mrb[4].mxu1  ;;  %v3467_v13 = vpop.f32.mrb[6].mxu0 }
 0x365   : > { %v1367_v14 = vadd.f32 %v2752_v11, %v1366_v12  ;;  %v2893_v15 = vpop.f32.mrb[5].mxu1  ;;  %v2900_v16 = vpop.f32.mrb[7].mxu0 }
 0x367   : > { %v1371_v17 = vand.u32 2147483647, %v1367_v14  ;;  %v1370_v24 = vmax.f32 %v1367_v14, 0.0 }
 0x369   : > { %v1372_v18 = vsub.f32 0.0, %v1371_v17 }
 0x36b   : > { %v1373_v19 = vmul.f32 1.442695, %v1372_v18 }
 0x36d   : > { %3089 = vpow2.f32 %v1373_v19 }
 0x377   : > { %v3090_v20 = vpop.eup %3089 }
 0x378   : > { %v1375_v22 = vadd.f32 1.0, %v3090_v20 }
 0x37a   : > { %3091 = vlog2.f32 %v1375_v22 }
 0x384   : > { %v3092_v23 = vpop.eup %3091 }
 0x385   : > { %v1377_v25 = vmul.f32 0.6931472, %v3092_v23 }
 0x387   : > { %v1378_v26 = vadd.f32 %v1377_v25, %v1370_v24 }
 0x389   : > { %v1477_v30 = vrot.slane %v1378_v26, %v3385_v54  ;;  %v1585_v31 = vrot.slane %v1378_v26, %v3389_v57  ;;  %v1691_v32 = vrot.slane %v1378_v26, %v3392_v58  ;;  %v1797_v44 = vrot.slane %v1378_v26, %v3399_v60 }
 0x38a   : > { %v1903_v47 = vrot.slane %v1378_v26, %v3430_v35  ;;  %v2009_v50 = vrot.slane %v1378_v26, %v3437_v42  ;;  %v2115_v61 = vrot.slane %v1378_v26, %v3444_v48  ;;  %v3481_v63 = vmul.f32 %v1378_v26, %v3409_v21 }
 0x38b   : > { %v1478_v34 = vmul.f32 %v1477_v30, %v1457_v28  ;;  %v1479_v36 = vmul.f32 %v1477_v30, %v1458_v29  ;;  %v1586_v38 = vmul.f32 %v1585_v31, %v1457_v28  ;;  %v1587_v40 = vmul.f32 %v1585_v31, %v1458_v29 }
 0x38c   : > { %v1692_v41 = vmul.f32 %v1691_v32, %v1457_v28  ;;  %v1693_v43 = vmul.f32 %v1691_v32, %v1458_v29  ;;  %v1798_v52 = vmul.f32 %v1797_v44, %v1457_v28  ;;  %v1799_v53 = vmul.f32 %v1797_v44, %v1458_v29  ;;  %v1790_v32 = vpop.xlane.xlu1 %1789 }
 0x38d   : > { %v1480_v45 = vmul.f32 1.442695, %v1478_v34  ;;  %v1482_v46 = vmul.f32 1.442695, %v1479_v36  ;;  %v1588_v49 = vmul.f32 1.442695, %v1586_v38  ;;  %v1904_v59 = vmul.f32 %v1903_v47, %v1457_v28 }
 0x38e   : > { %v1590_v51 = vmul.f32 1.442695, %v1587_v40  ;;  %v1694_v0 = vmul.f32 1.442695, %v1692_v41  ;;  %v1905_v1 = vmul.f32 %v1903_v47, %v1458_v29  ;;  %v1696_v2 = vmul.f32 1.442695, %v1693_v43 }
 0x38f   : > { %3093 = vpow2.f32 %v1480_v45  ;;  %v2010_v3 = vmul.f32 %v2009_v50, %v1457_v28  ;;  %v2011_v27 = vmul.f32 %v2009_v50, %v1458_v29  ;;  %v2116_v4 = vmul.f32 %v2115_v61, %v1457_v28 }
 0x390   : > { %3095 = vpow2.f32 %v1482_v46  ;;  %v1489_v7 = vrot.slane %v3481_v63, %v3385_v54  ;;  %v1800_v9 = vmul.f32 1.442695, %v1798_v52  ;;  %v1802_v11 = vmul.f32 1.442695, %v1799_v53 }
 0x391   : > { %3097 = vpow2.f32 %v1588_v49  ;;  %v2117_v12 = vmul.f32 %v2115_v61, %v1458_v29  ;;  %v2221_v15 = vrot.slane %v1378_v26, %v3451_v55  ;;  %v1597_v20 = vrot.slane %v3481_v63, %v3389_v57  ;;  %v1793_v26 = vpop.xlane.xlu0 %1792 }
 0x392   : > { %3099 = vpow2.f32 %v1590_v51  ;;  %v1490_v18 = vmul.f32 %v1489_v7, %v1470_v39  ;;  %v1491_v19 = vmul.f32 %v1489_v7, %v1473_v33  ;;  %v1906_v54 = vmul.f32 1.442695, %v1904_v59  ;;  %v1896_v51 = vpop.xlane.xlu1 %1895 }
 0x393   : > { %3101 = vpow2.f32 %v1694_v0  ;;  %v2222_v23 = vmul.f32 %v2221_v15, %v1457_v28  ;;  %v1908_v25 = vmul.f32 1.442695, %v1905_v1  ;;  %v2223_v30 = vmul.f32 %v2221_v15, %v1458_v29 }
 0x394   : > { %3103 = vpow2.f32 %v1696_v2  ;;  %v1598_v40 = vmul.f32 %v1597_v20, %v1578_v56  ;;  %v1599_v39 = vmul.f32 %v1597_v20, %v1581_v62  ;;  %v1703_v33 = vrot.slane %v3481_v63, %v3392_v58 }
 0x395   : > { %3105 = vpow2.f32 %v1800_v9  ;;  %v2012_v43 = vmul.f32 1.442695, %v2010_v3  ;;  %v2014_v44 = vmul.f32 1.442695, %v2011_v27  ;;  %v1809_v58 = vrot.slane %v3481_v63, %v3399_v60  ;;  %v1899_v59 = vpop.xlane.xlu0 %1898 }
 0x396   : > { %3107 = vpow2.f32 %v1802_v11  ;;  %v1704_v49 = vmul.f32 %v1703_v33, %v1684_v8  ;;  %v1705_v50 = vmul.f32 %v1703_v33, %v1687_v10  ;;  %v2118_v56 = vmul.f32 1.442695, %v2116_v4  ;;  %v2002_v15 = vpop.xlane.xlu1 %2001 }
 0x397   : > { %3109 = vpow2.f32 %v1906_v54  ;;  %v2120_v62 = vmul.f32 1.442695, %v2117_v12  ;;  %v1602_v1 = vrot.slane %v3467_v13, 1  ;;  %v1810_v27 = vmul.f32 %v1809_v58, %v1790_v32 }
 0x398   : > { %3111 = vpow2.f32 %v1908_v25  ;;  %v1811_v4 = vmul.f32 %v1809_v58, %v1793_v26  ;;  %v1915_v7 = vrot.slane %v3481_v63, %v3430_v35  ;;  %v2224_v10 = vmul.f32 1.442695, %v2222_v23 }
 0x399   : > { %v3094_v14 = vpop.eup %3093  ;;  %3113 = vpow2.f32 %v2012_v43  ;;  %v2226_v12 = vmul.f32 1.442695, %v2223_v30  ;;  %v1708_v35 = vrot.slane %v3467_v13, 2  ;;  %v2127_v26 = vrot.slane %v3481_v63, %v3444_v48 }
 0x39a   : > { %v3096_v16 = vpop.eup %3095  ;;  %v1484_v17 = vmul.f32 0.0, %v3094_v14  ;;  %3115 = vpow2.f32 %v2014_v44  ;;  %v1916_v20 = vmul.f32 %v1915_v7, %v1896_v51 }
 0x39b   : > { %v1485_v22 = vmul.f32 0.0, %v3096_v16  ;;  %v3098_v31 = vpop.eup %3097  ;;  %3117 = vpow2.f32 %v2118_v56 }
 0x39c   : > { %v1492_v24 = vadd.f32 %v1490_v18, %v1484_v17  ;;  %v3100_v36 = vpop.eup %3099  ;;  %3119 = vpow2.f32 %v2120_v62  ;;  %v2005_v18 = vpop.xlane.xlu0 %2004 }
 0x39d   : > { %v1493_v34 = vadd.f32 %v1491_v19, %v1485_v22  ;;  %v3102_v45 = vpop.eup %3101  ;;  %v2021_v22 = vrot.slane %v3481_v63, %v3437_v42  ;;  %3121 = vpow2.f32 %v2224_v10  ;;  %v2332_v10 = vld [vmem:[%s812_s20 + $0x10] sm:$0xff] }
 0x39e   : > { %v1592_v38 = vmul.f32 %v3098_v31, %v1492_v24  ;;  %v3104_v46 = vpop.eup %3103  ;;  %3123 = vpow2.f32 %v2226_v12 }
 0x39f   : > { %v3005_v57 = vpack.c.bf16 %v1493_v34, %v1492_v24  ;;  %v1593_v41 = vmul.f32 %v3100_v36, %v1493_v34  ;;  %v3106_v0 = vpop.eup %3105  ;;  %v1917_v24 = vmul.f32 %v1915_v7, %v1899_v59  ;;  %v1814_v34 = vrot.slane %v3467_v13, 3  ;;  %v2330_v7 = vld [vmem:[%s812_s20] sm:$0xff] }
 0x3a0   : > { %v1600_v28 = vadd.f32 %v1598_v40, %v1592_v38  ;;  %v3108_v2 = vpop.eup %3107  ;;  %v2022_v36 = vmul.f32 %v2021_v22, %v2002_v15  ;;  %v2108_v38 = vpop.xlane.xlu1 %2107  ;;  %v2023_v33 = vmul.f32 %v2021_v22, %v2005_v18  ;;  %v2336_v15 = vld [vmem:[%s812_s20 + $0x30] sm:$0xff]  ;;  %v2322_v18 = vsub.f32 0.0, %v3358_v37 }
 0x3a1   : > { %3006 = vmatpush3.bf16.msra.mxu0 %v3005_v57  ;;  %v1601_v29 = vadd.f32 %v1599_v39, %v1593_v41  ;;  %v3110_v14 = vpop.eup %3109  ;;  %v2111_v57 = vpop.xlane.xlu0 %2110 }
 0x3a2   : > { %3007 = vmatprep.subr.bf16.mxu0 %v3169_v5  ;;  %v1698_v47 = vmul.f32 %v3102_v45, %v1600_v28  ;;  %v3112_v17 = vpop.eup %3111  ;;  %v1920_v45 = vrot.slane %v3467_v13, 4 }
 0x3a3   : > { %v3008_v52 = vpack.c.bf16 %v1601_v29, %v1600_v28  ;;  %v1699_v53 = vmul.f32 %v3104_v46, %v1601_v29  ;;  %v3114_v30 = vpop.eup %3113  ;;  %v2128_v29 = vmul.f32 %v2127_v26, %v2108_v38  ;;  %v2233_v46 = vrot.slane %v3481_v63, %v3451_v55 }
 0x3a4   : > { %2906 = vmatmul.mubr.msk.f32.vlgmr.msra.gmra.mrb[8].mxu0 %vm1494_vm8, %v3467_v13  ;;  %v1706_v61 = vadd.f32 %v1704_v49, %v1698_v47  ;;  %v3116_v32 = vpop.eup %3115 }
 0x3a5   : > { %3009 = vmatpush3.bf16.msra.mxu0 %v3008_v52  ;;  %2912 = vmatprep.mubr.msk.f32.mxu0 %vm3170_vm1, %v3171_v6  ;;  %v1707_v60 = vadd.f32 %v1705_v50, %v1699_v53  ;;  %v3118_v43 = vpop.eup %3117  ;;  %v2129_v50 = vmul.f32 %v2127_v26, %v2111_v57  ;;  %v2214_v52 = vpop.xlane.xlu1 %2213 }
 0x3a6   : > { %3013 = vmatprep.subr.bf16.mxu0 %v3169_v5  ;;  %v1804_v3 = vmul.f32 %v3106_v0, %v1706_v61  ;;  %v3120_v44 = vpop.eup %3119  ;;  %v2217_v59 = vpop.xlane.xlu0 %2216  ;;  %v2234_v63 = vmul.f32 %v2233_v46, %v2214_v52 }
 0x3a7   : > { %v3011_v8 = vpack.c.bf16 %v1707_v60, %v1706_v61  ;;  %v1805_v9 = vmul.f32 %v3108_v2, %v1707_v60  ;;  %v3122_v51 = vpop.eup %3121  ;;  %v2026_v61 = vrot.slane %v3467_v13, 5 }
 0x3a8   : > { %2913 = vmatmul.mubr.msk.f32.vlgmr.msra.gmra.mrb[10].mxu0 %vm1494_vm8, %v1602_v1  ;;  %v1812_v11 = vadd.f32 %v1810_v27, %v1804_v3  ;;  %v3124_v56 = vpop.eup %3123  ;;  %v2235_v1 = vmul.f32 %v2233_v46, %v2217_v59  ;;  %v2132_v3 = vrot.slane %v3467_v13, 6 }
 0x3a9   : > { %3012 = vmatpush3.bf16.msra.mxu1 %v3011_v8  ;;  %v1813_v16 = vadd.f32 %v1811_v4, %v1805_v9  ;;  %2926 = vmatprep.mubr.msk.f32.mxu0 %vm3170_vm1, %v3171_v6  ;;  %v2238_v4 = vrot.slane %v3467_v13, 7  ;;  %v2331_v8 = vld [vmem:[%s812_s20 + $0x8] sm:$0xff] }
 0x3aa   : > { %3016 = vmatprep.subr.bf16.mxu1 %v3169_v5  ;;  %v1910_v19 = vmul.f32 %v3110_v14, %v1812_v11  ;;  %v3029_v9 = vpack.c.bf16 %v2331_v8, %v2330_v7  ;;  %v2334_v14 = vld [vmem:[%s812_s20 + $0x20] sm:$0xff] }
 0x3ab   : > { %v3014_v54 = vpack.c.bf16 %v1813_v16, %v1812_v11  ;;  %v1911_v23 = vmul.f32 %v3112_v17, %v1813_v16  ;;  %v2333_v11 = vld [vmem:[%s812_s20 + $0x18] sm:$0xff] }
 0x3ac   : > { %2920 = vmatmul.mubr.msk.f32.vlgmr.msra.gmra.mrb[6].mxu1 %vm1494_vm8, %v1708_v35  ;;  %v1918_v25 = vadd.f32 %v1916_v20, %v1910_v19  ;;  %v3032_v12 = vpack.c.bf16 %v2333_v11, %v2332_v10  ;;  %v2337_v16 = vld [vmem:[%s812_s20 + $0x38] sm:$0xff]  ;;  %v2323_v20 = vmul.f32 1.442695, %v2322_v18 }
 0x3ad   : > { %3015 = vmatpush3.bf16.msra.mxu0 %v3014_v54  ;;  %v1919_v31 = vadd.f32 %v1917_v24, %v1911_v23  ;;  %2933 = vmatprep.mubr.msk.f32.mxu1 %vm3170_vm1, %v3171_v6  ;;  %v3038_v17 = vpack.c.bf16 %v2337_v16, %v2336_v15 }
 0x3ae   : > { %3019 = vmatprep.subr.bf16.mxu0 %v3169_v5  ;;  %v2016_v42 = vmul.f32 %v3114_v30, %v1918_v25  ;;  %3125 = vpow2.f32 %v2323_v20 }
 0x3af   : > { %v3017_v40 = vpack.c.bf16 %v1919_v31, %v1918_v25  ;;  %v2017_v39 = vmul.f32 %v3116_v32, %v1919_v31 }
 0x3b0   : > { %2927 = vmatmul.mubr.msk.f32.vlgmr.msra.gmra.mrb[12].mxu0 %vm1494_vm8, %v1814_v34  ;;  %v2024_v41 = vadd.f32 %v2022_v36, %v2016_v42 }
 0x3b1   : > { %3018 = vmatpush3.bf16.msra.mxu1 %v3017_v40  ;;  %v2025_v28 = vadd.f32 %v2023_v33, %v2017_v39  ;;  %2940 = vmatprep.mubr.msk.f32.mxu0 %vm3170_vm1, %v3171_v6  ;;  %v2765_v33 = vld [vmem:[%s807_s28] ss:$0 sm:$0xff] }
 0x3b2   : > { %3022 = vmatprep.subr.bf16.mxu1 %v3169_v5  ;;  %v2122_v48 = vmul.f32 %v3118_v43, %v2024_v41 }
 0x3b3   : > { %v3020_v47 = vpack.c.bf16 %v2025_v28, %v2024_v41  ;;  %v2123_v49 = vmul.f32 %v3120_v44, %v2025_v28  ;;  %v2320_v41 = vmul.f32 %v2765_v33, %v3409_v21 }
 0x3b4   : > { %2934 = vmatmul.mubr.msk.f32.vlgmr.msra.gmra.mrb[8].mxu1 %vm1494_vm8, %v1920_v45  ;;  %v2130_v58 = vadd.f32 %v2128_v29, %v2122_v48  ;;  %v2766_v48 = vld [vmem:[%s815_s24] ss:$0 sm:$0xff] }
 0x3b5   : > { %3021 = vmatpush3.bf16.msra.mxu0 %v3020_v47  ;;  %v2131_v53 = vadd.f32 %v2129_v50, %v2123_v49  ;;  %2947 = vmatprep.mubr.msk.f32.mxu1 %vm3170_vm1, %v3171_v6 }
 0x3b6   : > { %3025 = vmatprep.subr.bf16.mxu0 %v3169_v5  ;;  %v2228_v55 = vmul.f32 %v3122_v51, %v2130_v58 }
 0x3b7   : > { %v3023_v62 = vpack.c.bf16 %v2131_v53, %v2130_v58  ;;  %v2229_v0 = vmul.f32 %v3124_v56, %v2131_v53 }
 0x3b8   : > { %2941 = vmatmul.mubr.msk.f32.vlgmr.msra.gmra.mrb[14].mxu0 %vm1494_vm8, %v2026_v61  ;;  %v2236_v60 = vadd.f32 %v2234_v63, %v2228_v55  ;;  %v3126_v31 = vpop.eup %3125 }
 0x3b9   : > { %3024 = vmatpush3.bf16.msra.mxu1 %v3023_v62  ;;  %v2237_v2 = vadd.f32 %v2235_v1, %v2229_v0  ;;  %2954 = vmatprep.mubr.msk.f32.mxu0 %vm3170_vm1, %v3171_v6  ;;  %v2325_v34 = vadd.f32 1.0, %v3126_v31 }
 0x3ba   : > { %3028 = vmatprep.subr.bf16.mxu1 %v3169_v5 }
 0x3bb   : > { %v3026_v27 = vpack.c.bf16 %v2237_v2, %v2236_v60  ;;  %3127 = vrcp.f32 %v2325_v34 }
 0x3bc   : > { %2948 = vmatmul.mubr.msk.f32.vlgmr.msra.gmra.mrb[10].mxu1 %vm1494_vm8, %v2132_v3 }
 0x3bd   : > { %3027 = vmatpush3.bf16.msra.mxu0 %v3026_v27  ;;  %2973 = vmatprep.mubr.msk.f32.mxu1 %vm3170_vm1, %v3171_v6  ;;  %v2335_v6 = vld [vmem:[%s812_s20 + $0x28] sm:$0xff] }
 0x3be   : > { %3030 = vmatpush3.bf16.msra.mxu1 %v3029_v9  ;;  %v3035_v13 = vpack.c.bf16 %v2335_v6, %v2334_v14 }
 0x3bf   : > { %3031 = vmatprep.subr.bf16.mxu1 %v3169_v5 }
 0x3c0   : > { %2955 = vmatmul.mubr.msk.f32.vlgmr.msra.gmra.mrb[16].mxu0 %vm1494_vm8, %v2238_v4 }
 0x3c2   : > { %3033 = vmatpush3.bf16.msra.mxu1 %v3032_v12 }
 0x3c3   : > { %3034 = vmatprep.subr.bf16.mxu1 %v3169_v5 }
 0x3c5   : > { %v3128_v57 = vpop.eup %3127 }
 0x3c6   : > { %3036 = vmatpush3.bf16.msra.mxu1 %v3035_v13  ;;  %v2328_v28 = vmul.f32 %v3128_v57, %v3358_v37 }
 0x3c7   : > { %3037 = vmatprep.subr.bf16.mxu1 %v3169_v5 }
 0x3ca   : > { %3039 = vmatpush3.bf16.msra.mxu1 %v3038_v17 }
 0x477   : > { %v1564_v35 = vpop.f32.mrb[8].mxu0 }
 0x478   : > { %1569 = vst.msk [vmem:[#allocation2] sm:$0x1] %vm1568_vm9, %v1564_v35  ;;  %v2907_v19 = vpop.f32.mrb[9].mxu0 }
 0x47b   : > { %v1671_v22 = vpop.f32.mrb[10].mxu0 }
 0x47c   : > { %1675 = vst.msk [vmem:[#allocation2 + $0x1] sm:$0x1] %vm1568_vm9, %v1671_v22  ;;  %v2914_v54 = vpop.f32.mrb[11].mxu0 }
 0x47f   : > { %v1777_v23 = vpop.f32.mrb[6].mxu1 }
 0x480   : > { %1781 = vst.msk [vmem:[#allocation2 + $0x2] sm:$0x1] %vm1568_vm9, %v1777_v23  ;;  %v2921_v24 = vpop.f32.mrb[7].mxu1 }
 0x483   : > { %v1883_v25 = vpop.f32.mrb[12].mxu0 }
 0x484   : > { %1887 = vst.msk [vmem:[#allocation2 + $0x3] sm:$0x1] %vm1568_vm9, %v1883_v25  ;;  %v2928_v5 = vpop.f32.mrb[13].mxu0 }
 0x487   : > { %v1989_v30 = vpop.f32.mrb[8].mxu1 }
 0x488   : > { %1993 = vst.msk [vmem:[#allocation2 + $0x4] sm:$0x1] %vm1568_vm9, %v1989_v30  ;;  %v2935_v32 = vpop.f32.mrb[9].mxu1 }
 0x48b   : > { %v2095_v42 = vpop.f32.mrb[14].mxu0 }
 0x48c   : > { %2099 = vst.msk [vmem:[#allocation2 + $0x5] sm:$0x1] %vm1568_vm9, %v2095_v42  ;;  %v2942_v36 = vpop.f32.mrb[15].mxu0 }
 0x48f   : > { %v2201_v26 = vpop.f32.mrb[10].mxu1 }
 0x490   : > { %2205 = vst.msk [vmem:[#allocation2 + $0x6] sm:$0x1] %vm1568_vm9, %v2201_v26  ;;  %v2949_v38 = vpop.f32.mrb[11].mxu1 }
 0x493   : > { %v2307_v40 = vpop.f32.mrb[16].mxu0 }
 0x494   : > { %2311 = vst.msk [vmem:[#allocation2 + $0x7] sm:$0x1] %vm1568_vm9, %v2307_v40  ;;  %v2956_v39 = vpop.f32.mrb[17].mxu0 }
 0x49b   : > { %v2312_v43 = vld [vmem:[#allocation2] sm:$0xff] }
 0x49c   : > { %v2321_v44 = vadd.f32 %v2320_v41, %v2312_v43 }
 0x49e   : > { %v2329_v45 = vmul.f32 %v2328_v28, %v2321_v44 }
 0x4a0   : > { %2974 = vmatmul.mubr.msk.f32.vlgmr.msra.gmra.mrb[12].mxu1 %vm1296_vm6, %v2329_v45 }
 0x573   : > { %v2414_v29 = vpop.f32.mrb[12].mxu1 }
 0x574   : > { %v2415_v46 = vadd.f32 %v2766_v48, %v2414_v29  ;;  %v2975_v47 = vpop.f32.mrb[13].mxu1 }
 0x576   : > { %2418 = vst.msk [vmem:[%s823_s0] sm:$0xff] %vm835_vm0, %v2415_v46 }
 0x577 PF: > { %s3612_s17 = sld [smem:[#allocation5_spill]]  ;;  %s3613_s21 = sld [smem:[#allocation3_spill]] }
 0x578   : > { %s3614_s22 = sld [smem:[#allocation4_spill]]  ;;  %s3615_s23 = sld [smem:[#allocation6_spill]] }
 0x579   : > { %s3616_s24 = sld [smem:[#allocation7_spill]] }
 0x57d   : > { %s27_s25 = sadd.s32 1, %s3612_s17  }
 0x57e   : > { %p24_p7 = scmp.ge.s32.totalorder %s27_s25, 6  }
 0x580   :  { %26 = sbr.rel (!%p24_p7) target bundleno = 3 (0x3), region = 164 }

// kernel: mamba_lm_head_forward.9
= control target key start
LH: loop header
LB: loop body
LE: loop exit
PB: predicated region body
PF: predicated region fallthrough
CT: control target
= control target key end

     0   :  { %v646_v3 = vmov 0.0   ;;  %vm83_vm0 = vcmask 261120   ;;  %vm472_vm5 = vcmask 1024   ;;  %s947_s3 = inlined_call_operand.vmem [shape: f32[32,512], index: 3, kind: input, shape index: {}]   ;;  %s948_s0 = inlined_call_operand.vmem [shape: f32[2,32], index: 0, kind: input, shape index: {}]   ;;  %s949_s1 = inlined_call_operand.vmem [shape: f32[1,32], index: 1, kind: input, shape index: {}]   ;;  %s950_s2 = inlined_call_operand.vmem [shape: f32[1,32], index: 2, kind: input, shape index: {}]   ;;  %s951_s5 = inlined_call_operand.vmem [shape: f32[512,1], index: 5, kind: input, shape index: {}]   ;;  %s952_s4 = inlined_call_operand.vmem [shape: f32[1,512], index: 4, kind: input, shape index: {}]   ;;  %s953_s6 = inlined_call_operand.<no memory space> [shape: f32[1,1], index: 6, kind: input, shape index: {}]   ;;  %s954_s7 = inlined_call_operand.vmem [shape: f32[2,1], index: 7, kind: output, shape index: {}]  }
   0x1   :  { %v46_v0 = vld [vmem:[%s947_s3 + $0x8] sm:$0xff]  ;;  %v48_v2 = vld [vmem:[%s947_s3 + $0x18] sm:$0xff]  ;;  %151 = vmatprep.mubr.f32.mxu0 %v646_v3  ;;  %222 = vmatprep.mubr.f32.mxu1 %v646_v3  ;;  %v45_v6 = vld [vmem:[%s947_s3] sm:$0xff] }
   0x2   :  { %v50_v1 = vld [vmem:[%s947_s3 + $0x28] sm:$0xff]  ;;  %v52_v5 = vld [vmem:[%s947_s3 + $0x38] sm:$0xff]  ;;  %v49_v7 = vld [vmem:[%s947_s3 + $0x20] sm:$0xff] }
   0x3   :  { %v557_v4 = vpack.c.bf16 %v50_v1, %v46_v0  ;;  %v565_v8 = vpack.c.bf16 %v52_v5, %v48_v2  ;;  %v559_v9 = vpack.c.bf16 %v49_v7, %v45_v6  ;;  %v47_v10 = vld [vmem:[%s947_s3 + $0x10] sm:$0xff]  ;;  %v54_v12 = vld [vmem:[%s947_s3 + $0x48] sm:$0xff]  ;;  %v56_v15 = vld [vmem:[%s947_s3 + $0x58] sm:$0xff] }
   0x4   :  { %v51_v11 = vld [vmem:[%s947_s3 + $0x30] sm:$0xff]  ;;  %v58_v14 = vld [vmem:[%s947_s3 + $0x68] sm:$0xff]  ;;  %v60_v16 = vld [vmem:[%s947_s3 + $0x78] sm:$0xff] }
   0x5   :  { %558 = vmatprep.subr.bf16.mxu0 %v557_v4  ;;  %v567_v13 = vpack.c.bf16 %v51_v11, %v47_v10  ;;  %566 = vmatprep.subr.bf16.mxu1 %v565_v8  ;;  %v561_v17 = vpack.c.bf16 %v58_v14, %v54_v12  ;;  %v569_v18 = vpack.c.bf16 %v60_v16, %v56_v15  ;;  %v53_v19 = vld [vmem:[%s947_s3 + $0x40] sm:$0xff]  ;;  %v55_v21 = vld [vmem:[%s947_s3 + $0x50] sm:$0xff]  ;;  %v278_v30 = vld [vmem:[%s951_s5 + $0x88] sm:$0xff] }
   0x6   :  { %560 = vmatpush1.bf16.msra.mxu0 %v559_v9  ;;  %v57_v20 = vld [vmem:[%s947_s3 + $0x60] sm:$0xff]  ;;  %v59_v23 = vld [vmem:[%s947_s3 + $0x70] sm:$0xff]  ;;  %v310_v33 = vld [vmem:[%s951_s5 + $0x188] sm:$0xff] }
   0x7   :  { %568 = vmatpush1.bf16.msra.mxu1 %v567_v13  ;;  %v563_v22 = vpack.c.bf16 %v57_v20, %v53_v19  ;;  %v28_v24 = vld [vmem:[%s948_s0] sm:$0x3]  ;;  %562 = vmatprep.subr.bf16.mxu0 %v561_v17  ;;  %v571_v26 = vpack.c.bf16 %v59_v23, %v55_v21  ;;  %v262_v37 = vld [vmem:[%s951_s5 + $0x8] sm:$0xff]  ;;  %v279_v42 = vld [vmem:[%s951_s5 + $0x90] sm:$0xff] }
   0x8   :  { %v478_v25 = vld [vmem:[%s949_s1] ss:$0 sm:$0xff]  ;;  %570 = vmatprep.subr.bf16.mxu1 %v569_v18  ;;  %v294_v39 = vld [vmem:[%s951_s5 + $0x108] sm:$0xff]  ;;  %v280_v43 = vld [vmem:[%s951_s5 + $0x98] sm:$0xff] }
   0x9   :  { %v36_v27 = vmul.f32 %v478_v25, %v28_v24  ;;  %v479_v28 = vld [vmem:[%s950_s2] ss:$0 sm:$0xff]  ;;  %v311_v44 = vld [vmem:[%s951_s5 + $0x190] sm:$0xff]  ;;  %v577_v45 = vpack.c.bf16 %v280_v43, %v279_v42  ;;  %v312_v46 = vld [vmem:[%s951_s5 + $0x198] sm:$0xff] }
   0xa   :  { %v277_v29 = vld [vmem:[%s951_s5 + $0x80] sm:$0xff]  ;;  %564 = vmatpush1.bf16.msra.mxu0 %v563_v22  ;;  %v609_v47 = vpack.c.bf16 %v312_v46, %v311_v44  ;;  %v263_v48 = vld [vmem:[%s951_s5 + $0x10] sm:$0xff]  ;;  %v264_v49 = vld [vmem:[%s951_s5 + $0x18] sm:$0xff] }
   0xb   :  { %v573_v31 = vpack.c.bf16 %v278_v30, %v277_v29  ;;  %v309_v32 = vld [vmem:[%s951_s5 + $0x180] sm:$0xff]  ;;  %v44_v35 = vadd.f32 %v479_v28, %v36_v27  ;;  %572 = vmatpush1.bf16.msra.mxu1 %v571_v26  ;;  %v295_v50 = vld [vmem:[%s951_s5 + $0x110] sm:$0xff]  ;;  %v579_v51 = vpack.c.bf16 %v264_v49, %v263_v48  ;;  %v296_v52 = vld [vmem:[%s951_s5 + $0x118] sm:$0xff] }
   0xc   :  { %v261_v34 = vld [vmem:[%s951_s5] sm:$0xff]  ;;  %v605_v36 = vpack.c.bf16 %v310_v33, %v309_v32  ;;  %v611_v53 = vpack.c.bf16 %v296_v52, %v295_v50  ;;  %v282_v55 = vld [vmem:[%s951_s5 + $0xa8] sm:$0xff]  ;;  %v283_v2 = vld [vmem:[%s951_s5 + $0xb0] sm:$0xff] }
   0xd   :  { %v293_v38 = vld [vmem:[%s951_s5 + $0x100] sm:$0xff]  ;;  %574 = vmatprep.subr.bf16.mxu0 %v573_v31  ;;  %v575_v40 = vpack.c.bf16 %v262_v37, %v261_v34  ;;  %480 = vmatmul.mubr.msk.f32.vlgmr.msra.gmra.mrb[0].mxu0 %vm83_vm0, %v44_v35  ;;  %v314_v58 = vld [vmem:[%s951_s5 + $0x1a8] sm:$0xff]  ;;  %v284_v3 = vld [vmem:[%s951_s5 + $0xb8] sm:$0xff] }
   0xe   :  { %v607_v41 = vpack.c.bf16 %v294_v39, %v293_v38  ;;  %606 = vmatprep.subr.bf16.mxu1 %v605_v36  ;;  %481 = vmatmul.mubr.msk.f32.vlgmr.msra.gmra.mrb[0].mxu1 %vm83_vm0, %v44_v35  ;;  %v281_v54 = vld [vmem:[%s951_s5 + $0xa0] sm:$0xff]  ;;  %v266_v60 = vld [vmem:[%s951_s5 + $0x28] sm:$0xff]  ;;  %v315_v4 = vld [vmem:[%s951_s5 + $0x1b0] sm:$0xff]  ;;  %v585_v5 = vpack.c.bf16 %v284_v3, %v283_v2 }
   0xf   :  { %576 = vmatpush3.bf16.msra.mxu0 %v575_v40  ;;  %v313_v56 = vld [vmem:[%s951_s5 + $0x1a0] sm:$0xff]  ;;  %v581_v57 = vpack.c.bf16 %v282_v55, %v281_v54  ;;  %v298_v0 = vld [vmem:[%s951_s5 + $0x128] sm:$0xff]  ;;  %v316_v6 = vld [vmem:[%s951_s5 + $0x1b8] sm:$0xff] }
  0x10   :  { %608 = vmatpush3.bf16.msra.mxu1 %v607_v41  ;;  %578 = vmatprep.subr.bf16.mxu0 %v577_v45  ;;  %v265_v59 = vld [vmem:[%s951_s5 + $0x20] sm:$0xff]  ;;  %v613_v61 = vpack.c.bf16 %v314_v58, %v313_v56  ;;  %v267_v7 = vld [vmem:[%s951_s5 + $0x30] sm:$0xff]  ;;  %v268_v8 = vld [vmem:[%s951_s5 + $0x38] sm:$0xff]  ;;  %v617_v9 = vpack.c.bf16 %v316_v6, %v315_v4 }
  0x11   :  { %610 = vmatprep.subr.bf16.mxu1 %v609_v47  ;;  %v583_v62 = vpack.c.bf16 %v266_v60, %v265_v59  ;;  %v297_v63 = vld [vmem:[%s951_s5 + $0x120] sm:$0xff]  ;;  %v587_v10 = vpack.c.bf16 %v268_v8, %v267_v7  ;;  %v299_v11 = vld [vmem:[%s951_s5 + $0x130] sm:$0xff]  ;;  %v300_v12 = vld [vmem:[%s951_s5 + $0x138] sm:$0xff] }
  0x12   :  { %v615_v1 = vpack.c.bf16 %v298_v0, %v297_v63  ;;  %v619_v13 = vpack.c.bf16 %v300_v12, %v299_v11  ;;  %v285_v14 = vld [vmem:[%s951_s5 + $0xc0] sm:$0xff]  ;;  %v286_v15 = vld [vmem:[%s951_s5 + $0xc8] sm:$0xff]  ;;  %v287_v26 = vld [vmem:[%s951_s5 + $0xd0] sm:$0xff] }
  0x13   :  { %580 = vmatpush3.bf16.msra.mxu0 %v579_v51  ;;  %v317_v16 = vld [vmem:[%s951_s5 + $0x1c0] sm:$0xff]  ;;  %v589_v17 = vpack.c.bf16 %v286_v15, %v285_v14  ;;  %v318_v18 = vld [vmem:[%s951_s5 + $0x1c8] sm:$0xff]  ;;  %v288_v27 = vld [vmem:[%s951_s5 + $0xd8] sm:$0xff] }
  0x14   :  { %612 = vmatpush3.bf16.msra.mxu1 %v611_v53  ;;  %582 = vmatprep.subr.bf16.mxu0 %v581_v57  ;;  %v269_v19 = vld [vmem:[%s951_s5 + $0x40] sm:$0xff]  ;;  %v270_v20 = vld [vmem:[%s951_s5 + $0x48] sm:$0xff]  ;;  %v621_v21 = vpack.c.bf16 %v318_v18, %v317_v16  ;;  %v319_v28 = vld [vmem:[%s951_s5 + $0x1d0] sm:$0xff]  ;;  %v593_v29 = vpack.c.bf16 %v288_v27, %v287_v26 }
  0x15   :  { %614 = vmatprep.subr.bf16.mxu1 %v613_v61  ;;  %v591_v22 = vpack.c.bf16 %v270_v20, %v269_v19  ;;  %v301_v23 = vld [vmem:[%s951_s5 + $0x140] sm:$0xff]  ;;  %v302_v24 = vld [vmem:[%s951_s5 + $0x148] sm:$0xff]  ;;  %v320_v30 = vld [vmem:[%s951_s5 + $0x1d8] sm:$0xff] }
  0x16   :  { %v623_v25 = vpack.c.bf16 %v302_v24, %v301_v23  ;;  %v271_v31 = vld [vmem:[%s951_s5 + $0x50] sm:$0xff]  ;;  %v272_v32 = vld [vmem:[%s951_s5 + $0x58] sm:$0xff]  ;;  %v625_v33 = vpack.c.bf16 %v320_v30, %v319_v28  ;;  %v289_v38 = vld [vmem:[%s951_s5 + $0xe0] sm:$0xff] }
  0x17   :  { %584 = vmatpush3.bf16.msra.mxu0 %v583_v62  ;;  %v595_v34 = vpack.c.bf16 %v272_v32, %v271_v31  ;;  %v303_v35 = vld [vmem:[%s951_s5 + $0x150] sm:$0xff]  ;;  %v304_v36 = vld [vmem:[%s951_s5 + $0x158] sm:$0xff]  ;;  %v290_v39 = vld [vmem:[%s951_s5 + $0xe8] sm:$0xff]  ;;  %v63_v62 = vlaneseq }
  0x18   :  { %616 = vmatpush3.bf16.msra.mxu1 %v615_v1  ;;  %586 = vmatprep.subr.bf16.mxu0 %v585_v5  ;;  %v627_v37 = vpack.c.bf16 %v304_v36, %v303_v35  ;;  %v321_v40 = vld [vmem:[%s951_s5 + $0x1e0] sm:$0xff]  ;;  %v597_v41 = vpack.c.bf16 %v290_v39, %v289_v38  ;;  %v322_v42 = vld [vmem:[%s951_s5 + $0x1e8] sm:$0xff]  ;;  %v291_v50 = vld [vmem:[%s951_s5 + $0xf0] sm:$0xff] }
  0x19   :  { %618 = vmatprep.subr.bf16.mxu1 %v617_v9  ;;  %v273_v43 = vld [vmem:[%s951_s5 + $0x60] sm:$0xff]  ;;  %v274_v44 = vld [vmem:[%s951_s5 + $0x68] sm:$0xff]  ;;  %v629_v45 = vpack.c.bf16 %v322_v42, %v321_v40  ;;  %v292_v51 = vld [vmem:[%s951_s5 + $0xf8] sm:$0xff]  ;;  %v64_v63 = vshrl.u32 %v63_v62, 7 }
  0x1a   :  { %v599_v46 = vpack.c.bf16 %v274_v44, %v273_v43  ;;  %v305_v47 = vld [vmem:[%s951_s5 + $0x160] sm:$0xff]  ;;  %v306_v48 = vld [vmem:[%s951_s5 + $0x168] sm:$0xff]  ;;  %v323_v52 = vld [vmem:[%s951_s5 + $0x1f0] sm:$0xff]  ;;  %v601_v53 = vpack.c.bf16 %v292_v51, %v291_v50 }
  0x1b   :  { %588 = vmatpush3.bf16.msra.mxu0 %v587_v10  ;;  %v631_v49 = vpack.c.bf16 %v306_v48, %v305_v47  ;;  %v324_v54 = vld [vmem:[%s951_s5 + $0x1f8] sm:$0xff]  ;;  %v275_v55 = vld [vmem:[%s951_s5 + $0x70] sm:$0xff]  ;;  %v65_v0 = vsub.s32 0, %v64_v63  ;;  %v61_v1 = vld [vmem:[%s952_s4] sm:$0xf]  ;;  %v73_v2 = vsub.s32 2, %v64_v63 }
  0x1c   :  { %620 = vmatpush3.bf16.msra.mxu1 %v619_v13  ;;  %590 = vmatprep.subr.bf16.mxu0 %v589_v17  ;;  %v276_v56 = vld [vmem:[%s951_s5 + $0x78] sm:$0xff]  ;;  %v633_v57 = vpack.c.bf16 %v324_v54, %v323_v52  ;;  %v307_v59 = vld [vmem:[%s951_s5 + $0x170] sm:$0xff]  ;;  %v69_v3 = vsub.s32 1, %v64_v63  ;;  %v77_v4 = vsub.s32 3, %v64_v63 }
  0x1d   :  { %622 = vmatprep.subr.bf16.mxu1 %v621_v21  ;;  %v603_v58 = vpack.c.bf16 %v276_v56, %v275_v55  ;;  %v308_v60 = vld [vmem:[%s951_s5 + $0x178] sm:$0xff]  ;;  %v66_v5 = vrot.slane %v61_v1, %v65_v0  ;;  %v74_v6 = vrot.slane %v61_v1, %v73_v2 }
  0x1e   :  { %v635_v61 = vpack.c.bf16 %v308_v60, %v307_v59  ;;  %v70_v7 = vrot.slane %v61_v1, %v69_v3  ;;  %v78_v8 = vrot.slane %v61_v1, %v77_v4 }
  0x1f   :  { %592 = vmatpush3.bf16.msra.mxu0 %v591_v22 }
  0x20   :  { %624 = vmatpush3.bf16.msra.mxu1 %v623_v25  ;;  %594 = vmatprep.subr.bf16.mxu0 %v593_v29 }
  0x21   :  { %626 = vmatprep.subr.bf16.mxu1 %v625_v33 }
  0x23   :  { %596 = vmatpush3.bf16.msra.mxu0 %v595_v34 }
  0x24   :  { %628 = vmatpush3.bf16.msra.mxu1 %v627_v37  ;;  %598 = vmatprep.subr.bf16.mxu0 %v597_v41 }
  0x25   :  { %630 = vmatprep.subr.bf16.mxu1 %v629_v45  ;;  %v12_v45 = vstv %s953_s6 }
  0x26   :  { %13 = vst [vmem:[#allocation2] sm:$0x1] %v12_v45 }
  0x27   :  { %600 = vmatpush3.bf16.msra.mxu0 %v599_v46 }
  0x28   :  { %632 = vmatpush3.bf16.msra.mxu1 %v631_v49  ;;  %602 = vmatprep.subr.bf16.mxu0 %v601_v53 }
  0x29   :  { %634 = vmatprep.subr.bf16.mxu1 %v633_v57 }
  0x2b   :  { %604 = vmatpush3.bf16.msra.mxu0 %v603_v58 }
  0x2c   :  { %636 = vmatpush3.bf16.msra.mxu1 %v635_v61 }
  0x2d   :  { %v486_v48 = vld [vmem:[#allocation2] ss:$0 sm:$0xff] }
  0xe0   :  { %v153_v9 = vpop.f32.mrb[0].mxu0 }
  0xe1   :  { %v154_v10 = vadd.f32 %v153_v9, %v66_v5  ;;  %v224_v11 = vpop.f32.mrb[0].mxu1  ;;  %v155_v12 = vpop.f32.mrb[1].mxu0 }
  0xe2   :  { %v225_v13 = vadd.f32 %v224_v11, %v74_v6  ;;  %v156_v14 = vadd.f32 %v155_v12, %v70_v7  ;;  %v226_v15 = vpop.f32.mrb[1].mxu1 }
  0xe3   :  { %v233_v16 = vmin.f32 %v154_v10, 0.0  ;;  %v227_v17 = vadd.f32 %v226_v15, %v78_v8  ;;  %vm229_vm1 = vcmp.gt.f32.partialorder %v154_v10, 0.0 }
  0xe4   :  { %v235_v18 = vmin.f32 %v225_v13, 0.0  ;;  %v234_v19 = vmin.f32 %v156_v14, 0.0  ;;  %vm231_vm2 = vcmp.gt.f32.partialorder %v225_v13, 0.0  ;;  %vm230_vm3 = vcmp.gt.f32.partialorder %v156_v14, 0.0 }
  0xe5   :  { %v237_v20 = vmul.f32 1.442695, %v233_v16  ;;  %v236_v21 = vmin.f32 %v227_v17, 0.0  ;;  %vm232_vm4 = vcmp.gt.f32.partialorder %v227_v17, 0.0 }
  0xe6   :  { %v241_v22 = vmul.f32 1.442695, %v235_v18  ;;  %v239_v23 = vmul.f32 1.442695, %v234_v19 }
  0xe7   :  { %638 = vpow2.f32 %v237_v20  ;;  %v243_v24 = vmul.f32 1.442695, %v236_v21 }
  0xe8   :  { %640 = vpow2.f32 %v241_v22 }
  0xe9   :  { %642 = vpow2.f32 %v239_v23 }
  0xea   :  { %644 = vpow2.f32 %v243_v24 }
  0xf1   :  { %v639_v25 = vpop.eup %638 }
  0xf2   :  { %v641_v26 = vpop.eup %640  ;;  %v482_v27 = vadd.f32 -1.0, %v639_v25 }
  0xf3   :  { %v643_v28 = vpop.eup %642  ;;  %v484_v29 = vadd.f32 -1.0, %v641_v26 }
  0xf4   :  { %v645_v30 = vpop.eup %644  ;;  %v249_v31 = vmul.f32 1.6732632, %v482_v27  ;;  %v483_v32 = vadd.f32 -1.0, %v643_v28 }
  0xf5   :  { %v251_v33 = vmul.f32 1.6732632, %v484_v29  ;;  %v485_v34 = vadd.f32 -1.0, %v645_v30 }
  0xf6   :  { %v250_v35 = vmul.f32 1.6732632, %v483_v32  ;;  %v253_v36 = vsel %vm229_vm1, %v154_v10, %v249_v31 }
  0xf7   :  { %v252_v37 = vmul.f32 1.6732632, %v485_v34  ;;  %v255_v38 = vsel %vm231_vm2, %v225_v13, %v251_v33  ;;  %v257_v42 = vmul.f32 1.050701, %v253_v36 }
  0xf8   :  { %v254_v39 = vsel %vm230_vm3, %v156_v14, %v250_v35  ;;  %v259_v44 = vmul.f32 1.050701, %v255_v38 }
  0xf9   :  { %v258_v40 = vmul.f32 1.050701, %v254_v39  ;;  %v256_v41 = vsel %vm232_vm4, %v227_v17, %v252_v37 }
  0xfa   :  { %v260_v43 = vmul.f32 1.050701, %v256_v41 }
  0xfb   :  { %396 = vmatprep.mubr.f32.mxu0 %v258_v40 }
  0xfc   :  { %466 = vmatprep.mubr.f32.mxu1 %v260_v43  ;;  %397 = vmatmul.mubr.f32.vlgmr.msra.gmra.mrb[2].mxu0 %v257_v42 }
  0xfd   :  { %467 = vmatmul.mubr.f32.vlgmr.msra.gmra.mrb[2].mxu1 %v259_v44 }
 0x1cf   :  { %v519_v46 = vpop.f32.mrb[2].mxu0 }
 0x1d0   :  { %v554_v47 = vpop.f32.mrb[2].mxu1  ;;  %v520_v49 = vpop.f32.mrb[3].mxu0 }
 0x1d1   :  { %v521_v50 = vadd.f32 %v520_v49, %v519_v46  ;;  %v555_v51 = vpop.f32.mrb[3].mxu1 }
 0x1d2   :  { %v556_v52 = vadd.f32 %v555_v51, %v554_v47 }
 0x1d3   :  { %v399_v53 = vadd.f32 %v521_v50, %v486_v48 }
 0x1d5   :  { %v469_v54 = vadd.f32 %v556_v52, %v399_v53 }
 0x1d7   :  { %473 = vst.msk [vmem:[%s954_s7] sm:$0x3] %vm472_vm5, %v469_v54 }

</bundles_post_ra>
